<compile_context>
chip_gen: v7x
topology: tpu7x:2x2x1
jax: 0.10.0
libtpu: 0.0.40
codegen_flags: <defaults>
</compile_context>

<pallas_src>
import functools

import numpy as np
import jax
import jax.numpy as jnp
from jax import lax
from jax.experimental import pallas as pl
from jax.experimental.pallas import tpu as pltpu

EPS = 1e-5
# 3x3 taps in row-major kernel order so tap index t == (dy+1)*3 + (dx+1).
TAPS = tuple((dy, dx) for dy in (-1, 0, 1) for dx in (-1, 0, 1))


def _shifted_tap(a, tap_idx, off, masks_ref):
    """a: (B, H*W) row-major flattened images.

    Returns s with s[b, p] = a[b, p + off] when the source pixel lies inside
    the HxW image, and 0 otherwise.  The shift is a single lane rotation
    (XLU); the precomputed combined 0/1 mask for this tap zeroes out values
    that wrapped across a row or image boundary.
    """
    HW = a.shape[-1]
    if off == 0:
        return a
    s = pltpu.roll(a, (-off) % HW, axis=1)
    return s * masks_ref[tap_idx:tap_idx + 1, :]


def _policy_head_kernel(x_ref, masks_ref,
                        w1_ref, b1_ref, g1_ref, be1_ref,
                        w2_ref, b2_ref, g2_ref, be2_ref,
                        out_ref, *, W):
    B, Cin, HW = x_ref.shape
    Cmid = b1_ref.shape[0]
    inv_n = 1.0 / float(B * HW)

    x = x_ref[...]                  # (B, Cin, HW) f32 -- a few vregs only

    # ---- conv1: 3x3, Cin -> Cmid, as rolled + scalar-weighted VPU MACs --------
    # Accumulators start from the broadcast conv bias (hoisted, one broadcast
    # per output channel).
    acc1 = [jnp.full((B, HW), b1_ref[co], jnp.float32) for co in range(Cmid)]
    for ci in range(Cin):
        xc = x[:, ci, :]                                    # (B, HW)
        for t, (dy, dx) in enumerate(TAPS):
            off = dy * W + dx
            xs = _shifted_tap(xc, t, off, masks_ref)        # shared across co
            for co in range(Cmid):
                w = w1_ref[(co * Cin + ci) * 9 + t]         # SMEM scalar
                acc1[co] = acc1[co] + xs * w

    # ---- bn1 (training-mode batch stats, biased var) + relu -------------------
    y1 = []
    for co in range(Cmid):
        a = acc1[co]
        mean = jnp.sum(a, axis=(0, 1), keepdims=True) * inv_n       # (1, 1)
        msq = jnp.sum(a * a, axis=(0, 1), keepdims=True) * inv_n    # single pass
        var = msq - mean * mean
        scale = g1_ref[co] * lax.rsqrt(var + EPS)
        y1.append(jnp.maximum((a - mean) * scale + be1_ref[co], 0.0))

    # ---- conv2: 3x3, Cmid -> 1 channel, pure VPU (no MXU) ----------------------
    acc2 = jnp.full((B, HW), b2_ref[0], jnp.float32)
    for ci in range(Cmid):
        yc = y1[ci]
        for t, (dy, dx) in enumerate(TAPS):
            off = dy * W + dx
            w = w2_ref[ci * 9 + t]
            acc2 = acc2 + _shifted_tap(yc, t, off, masks_ref) * w

    # ---- bn2 (single channel, batch stats) + relu ------------------------------
    mean2 = jnp.sum(acc2, axis=(0, 1), keepdims=True) * inv_n
    msq2 = jnp.sum(acc2 * acc2, axis=(0, 1), keepdims=True) * inv_n
    var2 = msq2 - mean2 * mean2
    z = jnp.maximum((acc2 - mean2) * (g2_ref[0] * lax.rsqrt(var2 + EPS))
                    + be2_ref[0], 0.0)

    # ---- flatten(1) is already the layout; softmax over the H*W lanes ----------
    m = jnp.max(z, axis=1, keepdims=True)
    e = jnp.exp(z - m)
    out_ref[...] = e / jnp.sum(e, axis=1, keepdims=True)


@jax.jit
def policy_head(x, w1, b1, g1, be1, w2, b2, g2, be2):
    """x: (B, Cin, H, W) NCHW like the PyTorch module.  Returns (B, H*W) softmax."""
    B, Cin, H, W = x.shape
    HW = H * W

    # Native NCHW order is kept; only the contiguous H,W flatten and the
    # one-time weight repack remain in plain JAX.
    xk = x.reshape(B, Cin, HW).astype(jnp.float32)
    w1k = w1.reshape(-1).astype(jnp.float32)       # (Cmid*Cin*9,), row-major
    w2k = w2.reshape(-1).astype(jnp.float32)       # (Cmid*9,)

    # Combined 0/1 edge-validity mask per tap (9, HW), built with numpy so
    # they are compile-time constants (zero runtime XLA ops).  mask[t, p] = 1
    # iff pixel p has an in-bounds neighbour at offset (dy, dx) of tap t.
    row = np.arange(HW, dtype=np.int32) // W
    col = np.arange(HW, dtype=np.int32) % W
    tap_masks = []
    for dy, dx in TAPS:
        m = np.ones(HW, dtype=np.float32)
        if dy < 0:
            m *= (row >= 1)
        elif dy > 0:
            m *= (row <= H - 2)
        if dx < 0:
            m *= (col >= 1)
        elif dx > 0:
            m *= (col <= W - 2)
        tap_masks.append(m.astype(np.float32))
    masks = jnp.asarray(np.stack(tap_masks))        # (9, HW)

    vmem = pl.BlockSpec(memory_space=pltpu.MemorySpace.VMEM)
    smem = pl.BlockSpec(memory_space=pltpu.MemorySpace.SMEM)
    kernel = functools.partial(_policy_head_kernel, W=W)
    return pl.pallas_call(
        kernel,
        out_shape=jax.ShapeDtypeStruct((B, HW), jnp.float32),
        in_specs=[vmem, vmem] + [smem] * 8,
        out_specs=vmem,
    )(xk, masks,
      w1k, b1.astype(jnp.float32), g1.astype(jnp.float32), be1.astype(jnp.float32),
      w2k, b2.astype(jnp.float32), g2.astype(jnp.float32), be2.astype(jnp.float32))


def policy_head_reference(x, w1, b1, g1, be1, w2, b2, g2, be2):
    """Plain-JAX (XLA) forward of the PyTorch module in training mode."""
    dn = ("NCHW", "OIHW", "NCHW")

    def bn_train(y, g, be):
        mean = jnp.mean(y, axis=(0, 2, 3), keepdims=True)
        var = jnp.var(y, axis=(0, 2, 3), keepdims=True)   # biased, like torch BN
        return ((y - mean) * lax.rsqrt(var + EPS) * g.reshape(1, -1, 1, 1)
                + be.reshape(1, -1, 1, 1))

    y = lax.conv_general_dilated(x, w1, (1, 1), ((1, 1), (1, 1)),
                                 dimension_numbers=dn) + b1.reshape(1, -1, 1, 1)
    y = jnp.maximum(bn_train(y, g1, be1), 0.0)
    y = lax.conv_general_dilated(y, w2, (1, 1), ((1, 1), (1, 1)),
                                 dimension_numbers=dn) + b2.reshape(1, -1, 1, 1)
    y = jnp.maximum(bn_train(y, g2, be2), 0.0)
    return jax.nn.softmax(y.reshape(y.shape[0], -1), axis=1)


if __name__ == "__main__":
    B, Cin, H, W = 2, 4, 16, 16          # small shapes; in_channel=4 -> mid=2
    Cmid = Cin // 2

    key = jax.random.PRNGKey(0)
    kx, k1, k2, k3, k4, k5, k6, k7, k8 = jax.random.split(key, 9)

    x = jax.random.normal(kx, (B, Cin, H, W), jnp.float32)

    # deterministic synthetic params (PyTorch shapes: conv w (Cout,Cin,3,3), bias (Cout,))
    w1 = 0.1 * jax.random.normal(k1, (Cmid, Cin, 3, 3), jnp.float32)
    b1 = 0.1 * jax.random.normal(k2, (Cmid,), jnp.float32)
    g1 = 1.0 + 0.1 * jax.random.normal(k3, (Cmid,), jnp.float32)   # bn1 weight
    be1 = 0.1 * jax.random.normal(k4, (Cmid,), jnp.float32)        # bn1 bias
    w2 = 0.1 * jax.random.normal(k5, (1, Cmid, 3, 3), jnp.float32)
    b2 = 0.1 * jax.random.normal(k6, (1,), jnp.float32)
    g2 = 1.0 + 0.1 * jax.random.normal(k7, (1,), jnp.float32)      # bn2 weight
    be2 = 0.1 * jax.random.normal(k8, (1,), jnp.float32)           # bn2 bias

    out = policy_head(x, w1, b1, g1, be1, w2, b2, g2, be2)
    out = jax.block_until_ready(out)

    ref = policy_head_reference(x, w1, b1, g1, be1, w2, b2, g2, be2)
    ref = jax.block_until_ready(ref)

    assert out.shape == (B, H * W)
    assert bool(jnp.all(jnp.isfinite(out)))
    assert bool(jnp.allclose(jnp.sum(out, axis=1), 1.0, atol=1e-4))
    max_err = float(jnp.max(jnp.abs(out - ref)))
    assert max_err < 2e-5, f"mismatch vs plain-JAX reference: max|diff|={max_err}"
    print("KERNEL_OK")
</pallas_src>

<mosaic_0001>
module attributes {stable_mosaic.version = 11 : i64} {
  func.func @_policy_head_kernel(%arg0: memref<2x4x256xf32, #tpu.memory_space<vmem>>, %arg1: memref<9x256xf32, #tpu.memory_space<vmem>>, %arg2: memref<72xf32, #tpu.memory_space<smem>>, %arg3: memref<2xf32, #tpu.memory_space<smem>>, %arg4: memref<2xf32, #tpu.memory_space<smem>>, %arg5: memref<2xf32, #tpu.memory_space<smem>>, %arg6: memref<18xf32, #tpu.memory_space<smem>>, %arg7: memref<1xf32, #tpu.memory_space<smem>>, %arg8: memref<1xf32, #tpu.memory_space<smem>>, %arg9: memref<1xf32, #tpu.memory_space<smem>>, %arg10: memref<2x256xf32, #tpu.memory_space<vmem>>) attributes {dimension_semantics = [], scalar_prefetch = 0 : i64, scratch_operands = 0 : i64, tpu.core_type = #tpu.core_type<tc>} {
    %c0 = arith.constant 0 : index
    %c0_0 = arith.constant 0 : index
    %c0_1 = arith.constant 0 : index
    %0 = vector.load %arg0[%c0, %c0_0, %c0_1] : memref<2x4x256xf32, #tpu.memory_space<vmem>>, vector<2x4x256xf32>
    %c0_2 = arith.constant 0 : index
    %1 = memref.load %arg3[%c0_2] : memref<2xf32, #tpu.memory_space<smem>>
    %2 = vector.broadcast %1 : f32 to vector<2x256xf32>
    %c1 = arith.constant 1 : index
    %3 = memref.load %arg3[%c1] : memref<2xf32, #tpu.memory_space<smem>>
    %4 = vector.broadcast %3 : f32 to vector<2x256xf32>
    %5 = vector.extract_strided_slice %0 {offsets = [0, 0, 0], sizes = [2, 1, 256], strides = [1, 1, 1]} : vector<2x4x256xf32> to vector<2x1x256xf32>
    %6 = vector.shape_cast %5 : vector<2x1x256xf32> to vector<2x256xf32>
    %c17_i32 = arith.constant 17 : i32
    %7 = tpu.dynamic_rotate %6 by %c17_i32 dim 1 : vector<2x256xf32>, i32 -> vector<2x256xf32>
    %c0_3 = arith.constant 0 : index
    %c0_4 = arith.constant 0 : index
    %8 = vector.load %arg1[%c0_3, %c0_4] : memref<9x256xf32, #tpu.memory_space<vmem>>, vector<1x256xf32>
    %9 = vector.broadcast %8 : vector<1x256xf32> to vector<2x256xf32>
    %10 = arith.mulf %7, %9 : vector<2x256xf32>
    %c0_5 = arith.constant 0 : index
    %11 = memref.load %arg2[%c0_5] : memref<72xf32, #tpu.memory_space<smem>>
    %12 = vector.broadcast %11 : f32 to vector<2x256xf32>
    %13 = arith.mulf %10, %12 : vector<2x256xf32>
    %14 = arith.addf %2, %13 : vector<2x256xf32>
    %c36 = arith.constant 36 : index
    %15 = memref.load %arg2[%c36] : memref<72xf32, #tpu.memory_space<smem>>
    %16 = vector.broadcast %15 : f32 to vector<2x256xf32>
    %17 = arith.mulf %10, %16 : vector<2x256xf32>
    %18 = arith.addf %4, %17 : vector<2x256xf32>
    %c16_i32 = arith.constant 16 : i32
    %19 = tpu.dynamic_rotate %6 by %c16_i32 dim 1 : vector<2x256xf32>, i32 -> vector<2x256xf32>
    %c1_6 = arith.constant 1 : index
    %c0_7 = arith.constant 0 : index
    %20 = vector.load %arg1[%c1_6, %c0_7] : memref<9x256xf32, #tpu.memory_space<vmem>>, vector<1x256xf32>
    %21 = vector.broadcast %20 : vector<1x256xf32> to vector<2x256xf32>
    %22 = arith.mulf %19, %21 : vector<2x256xf32>
    %c1_8 = arith.constant 1 : index
    %23 = memref.load %arg2[%c1_8] : memref<72xf32, #tpu.memory_space<smem>>
    %24 = vector.broadcast %23 : f32 to vector<2x256xf32>
    %25 = arith.mulf %22, %24 : vector<2x256xf32>
    %26 = arith.addf %14, %25 : vector<2x256xf32>
    %c37 = arith.constant 37 : index
    %27 = memref.load %arg2[%c37] : memref<72xf32, #tpu.memory_space<smem>>
    %28 = vector.broadcast %27 : f32 to vector<2x256xf32>
    %29 = arith.mulf %22, %28 : vector<2x256xf32>
    %30 = arith.addf %18, %29 : vector<2x256xf32>
    %c15_i32 = arith.constant 15 : i32
    %31 = tpu.dynamic_rotate %6 by %c15_i32 dim 1 : vector<2x256xf32>, i32 -> vector<2x256xf32>
    %c2 = arith.constant 2 : index
    %c0_9 = arith.constant 0 : index
    %32 = vector.load %arg1[%c2, %c0_9] : memref<9x256xf32, #tpu.memory_space<vmem>>, vector<1x256xf32>
    %33 = vector.broadcast %32 : vector<1x256xf32> to vector<2x256xf32>
    %34 = arith.mulf %31, %33 : vector<2x256xf32>
    %c2_10 = arith.constant 2 : index
    %35 = memref.load %arg2[%c2_10] : memref<72xf32, #tpu.memory_space<smem>>
    %36 = vector.broadcast %35 : f32 to vector<2x256xf32>
    %37 = arith.mulf %34, %36 : vector<2x256xf32>
    %38 = arith.addf %26, %37 : vector<2x256xf32>
    %c38 = arith.constant 38 : index
    %39 = memref.load %arg2[%c38] : memref<72xf32, #tpu.memory_space<smem>>
    %40 = vector.broadcast %39 : f32 to vector<2x256xf32>
    %41 = arith.mulf %34, %40 : vector<2x256xf32>
    %42 = arith.addf %30, %41 : vector<2x256xf32>
    %c1_i32 = arith.constant 1 : i32
    %43 = tpu.dynamic_rotate %6 by %c1_i32 dim 1 : vector<2x256xf32>, i32 -> vector<2x256xf32>
    %c3 = arith.constant 3 : index
    %c0_11 = arith.constant 0 : index
    %44 = vector.load %arg1[%c3, %c0_11] : memref<9x256xf32, #tpu.memory_space<vmem>>, vector<1x256xf32>
    %45 = vector.broadcast %44 : vector<1x256xf32> to vector<2x256xf32>
    %46 = arith.mulf %43, %45 : vector<2x256xf32>
    %c3_12 = arith.constant 3 : index
    %47 = memref.load %arg2[%c3_12] : memref<72xf32, #tpu.memory_space<smem>>
    %48 = vector.broadcast %47 : f32 to vector<2x256xf32>
    %49 = arith.mulf %46, %48 : vector<2x256xf32>
    %50 = arith.addf %38, %49 : vector<2x256xf32>
    %c39 = arith.constant 39 : index
    %51 = memref.load %arg2[%c39] : memref<72xf32, #tpu.memory_space<smem>>
    %52 = vector.broadcast %51 : f32 to vector<2x256xf32>
    %53 = arith.mulf %46, %52 : vector<2x256xf32>
    %54 = arith.addf %42, %53 : vector<2x256xf32>
    %c4 = arith.constant 4 : index
    %55 = memref.load %arg2[%c4] : memref<72xf32, #tpu.memory_space<smem>>
    %56 = vector.broadcast %55 : f32 to vector<2x256xf32>
    %57 = arith.mulf %6, %56 : vector<2x256xf32>
    %58 = arith.addf %50, %57 : vector<2x256xf32>
    %c40 = arith.constant 40 : index
    %59 = memref.load %arg2[%c40] : memref<72xf32, #tpu.memory_space<smem>>
    %60 = vector.broadcast %59 : f32 to vector<2x256xf32>
    %61 = arith.mulf %6, %60 : vector<2x256xf32>
    %62 = arith.addf %54, %61 : vector<2x256xf32>
    %c255_i32 = arith.constant 255 : i32
    %63 = tpu.dynamic_rotate %6 by %c255_i32 dim 1 : vector<2x256xf32>, i32 -> vector<2x256xf32>
    %c5 = arith.constant 5 : index
    %c0_13 = arith.constant 0 : index
    %64 = vector.load %arg1[%c5, %c0_13] : memref<9x256xf32, #tpu.memory_space<vmem>>, vector<1x256xf32>
    %65 = vector.broadcast %64 : vector<1x256xf32> to vector<2x256xf32>
    %66 = arith.mulf %63, %65 : vector<2x256xf32>
    %c5_14 = arith.constant 5 : index
    %67 = memref.load %arg2[%c5_14] : memref<72xf32, #tpu.memory_space<smem>>
    %68 = vector.broadcast %67 : f32 to vector<2x256xf32>
    %69 = arith.mulf %66, %68 : vector<2x256xf32>
    %70 = arith.addf %58, %69 : vector<2x256xf32>
    %c41 = arith.constant 41 : index
    %71 = memref.load %arg2[%c41] : memref<72xf32, #tpu.memory_space<smem>>
    %72 = vector.broadcast %71 : f32 to vector<2x256xf32>
    %73 = arith.mulf %66, %72 : vector<2x256xf32>
    %74 = arith.addf %62, %73 : vector<2x256xf32>
    %c241_i32 = arith.constant 241 : i32
    %75 = tpu.dynamic_rotate %6 by %c241_i32 dim 1 : vector<2x256xf32>, i32 -> vector<2x256xf32>
    %c6 = arith.constant 6 : index
    %c0_15 = arith.constant 0 : index
    %76 = vector.load %arg1[%c6, %c0_15] : memref<9x256xf32, #tpu.memory_space<vmem>>, vector<1x256xf32>
    %77 = vector.broadcast %76 : vector<1x256xf32> to vector<2x256xf32>
    %78 = arith.mulf %75, %77 : vector<2x256xf32>
    %c6_16 = arith.constant 6 : index
    %79 = memref.load %arg2[%c6_16] : memref<72xf32, #tpu.memory_space<smem>>
    %80 = vector.broadcast %79 : f32 to vector<2x256xf32>
    %81 = arith.mulf %78, %80 : vector<2x256xf32>
    %82 = arith.addf %70, %81 : vector<2x256xf32>
    %c42 = arith.constant 42 : index
    %83 = memref.load %arg2[%c42] : memref<72xf32, #tpu.memory_space<smem>>
    %84 = vector.broadcast %83 : f32 to vector<2x256xf32>
    %85 = arith.mulf %78, %84 : vector<2x256xf32>
    %86 = arith.addf %74, %85 : vector<2x256xf32>
    %c240_i32 = arith.constant 240 : i32
    %87 = tpu.dynamic_rotate %6 by %c240_i32 dim 1 : vector<2x256xf32>, i32 -> vector<2x256xf32>
    %c7 = arith.constant 7 : index
    %c0_17 = arith.constant 0 : index
    %88 = vector.load %arg1[%c7, %c0_17] : memref<9x256xf32, #tpu.memory_space<vmem>>, vector<1x256xf32>
    %89 = vector.broadcast %88 : vector<1x256xf32> to vector<2x256xf32>
    %90 = arith.mulf %87, %89 : vector<2x256xf32>
    %c7_18 = arith.constant 7 : index
    %91 = memref.load %arg2[%c7_18] : memref<72xf32, #tpu.memory_space<smem>>
    %92 = vector.broadcast %91 : f32 to vector<2x256xf32>
    %93 = arith.mulf %90, %92 : vector<2x256xf32>
    %94 = arith.addf %82, %93 : vector<2x256xf32>
    %c43 = arith.constant 43 : index
    %95 = memref.load %arg2[%c43] : memref<72xf32, #tpu.memory_space<smem>>
    %96 = vector.broadcast %95 : f32 to vector<2x256xf32>
    %97 = arith.mulf %90, %96 : vector<2x256xf32>
    %98 = arith.addf %86, %97 : vector<2x256xf32>
    %c239_i32 = arith.constant 239 : i32
    %99 = tpu.dynamic_rotate %6 by %c239_i32 dim 1 : vector<2x256xf32>, i32 -> vector<2x256xf32>
    %c8 = arith.constant 8 : index
    %c0_19 = arith.constant 0 : index
    %100 = vector.load %arg1[%c8, %c0_19] : memref<9x256xf32, #tpu.memory_space<vmem>>, vector<1x256xf32>
    %101 = vector.broadcast %100 : vector<1x256xf32> to vector<2x256xf32>
    %102 = arith.mulf %99, %101 : vector<2x256xf32>
    %c8_20 = arith.constant 8 : index
    %103 = memref.load %arg2[%c8_20] : memref<72xf32, #tpu.memory_space<smem>>
    %104 = vector.broadcast %103 : f32 to vector<2x256xf32>
    %105 = arith.mulf %102, %104 : vector<2x256xf32>
    %106 = arith.addf %94, %105 : vector<2x256xf32>
    %c44 = arith.constant 44 : index
    %107 = memref.load %arg2[%c44] : memref<72xf32, #tpu.memory_space<smem>>
    %108 = vector.broadcast %107 : f32 to vector<2x256xf32>
    %109 = arith.mulf %102, %108 : vector<2x256xf32>
    %110 = arith.addf %98, %109 : vector<2x256xf32>
    %111 = vector.extract_strided_slice %0 {offsets = [0, 1, 0], sizes = [2, 1, 256], strides = [1, 1, 1]} : vector<2x4x256xf32> to vector<2x1x256xf32>
    %112 = vector.shape_cast %111 : vector<2x1x256xf32> to vector<2x256xf32>
    %c17_i32_21 = arith.constant 17 : i32
    %113 = tpu.dynamic_rotate %112 by %c17_i32_21 dim 1 : vector<2x256xf32>, i32 -> vector<2x256xf32>
    %c0_22 = arith.constant 0 : index
    %c0_23 = arith.constant 0 : index
    %114 = vector.load %arg1[%c0_22, %c0_23] : memref<9x256xf32, #tpu.memory_space<vmem>>, vector<1x256xf32>
    %115 = vector.broadcast %114 : vector<1x256xf32> to vector<2x256xf32>
    %116 = arith.mulf %113, %115 : vector<2x256xf32>
    %c9 = arith.constant 9 : index
    %117 = memref.load %arg2[%c9] : memref<72xf32, #tpu.memory_space<smem>>
    %118 = vector.broadcast %117 : f32 to vector<2x256xf32>
    %119 = arith.mulf %116, %118 : vector<2x256xf32>
    %120 = arith.addf %106, %119 : vector<2x256xf32>
    %c45 = arith.constant 45 : index
    %121 = memref.load %arg2[%c45] : memref<72xf32, #tpu.memory_space<smem>>
    %122 = vector.broadcast %121 : f32 to vector<2x256xf32>
    %123 = arith.mulf %116, %122 : vector<2x256xf32>
    %124 = arith.addf %110, %123 : vector<2x256xf32>
    %c16_i32_24 = arith.constant 16 : i32
    %125 = tpu.dynamic_rotate %112 by %c16_i32_24 dim 1 : vector<2x256xf32>, i32 -> vector<2x256xf32>
    %c1_25 = arith.constant 1 : index
    %c0_26 = arith.constant 0 : index
    %126 = vector.load %arg1[%c1_25, %c0_26] : memref<9x256xf32, #tpu.memory_space<vmem>>, vector<1x256xf32>
    %127 = vector.broadcast %126 : vector<1x256xf32> to vector<2x256xf32>
    %128 = arith.mulf %125, %127 : vector<2x256xf32>
    %c10 = arith.constant 10 : index
    %129 = memref.load %arg2[%c10] : memref<72xf32, #tpu.memory_space<smem>>
    %130 = vector.broadcast %129 : f32 to vector<2x256xf32>
    %131 = arith.mulf %128, %130 : vector<2x256xf32>
    %132 = arith.addf %120, %131 : vector<2x256xf32>
    %c46 = arith.constant 46 : index
    %133 = memref.load %arg2[%c46] : memref<72xf32, #tpu.memory_space<smem>>
    %134 = vector.broadcast %133 : f32 to vector<2x256xf32>
    %135 = arith.mulf %128, %134 : vector<2x256xf32>
    %136 = arith.addf %124, %135 : vector<2x256xf32>
    %c15_i32_27 = arith.constant 15 : i32
    %137 = tpu.dynamic_rotate %112 by %c15_i32_27 dim 1 : vector<2x256xf32>, i32 -> vector<2x256xf32>
    %c2_28 = arith.constant 2 : index
    %c0_29 = arith.constant 0 : index
    %138 = vector.load %arg1[%c2_28, %c0_29] : memref<9x256xf32, #tpu.memory_space<vmem>>, vector<1x256xf32>
    %139 = vector.broadcast %138 : vector<1x256xf32> to vector<2x256xf32>
    %140 = arith.mulf %137, %139 : vector<2x256xf32>
    %c11 = arith.constant 11 : index
    %141 = memref.load %arg2[%c11] : memref<72xf32, #tpu.memory_space<smem>>
    %142 = vector.broadcast %141 : f32 to vector<2x256xf32>
    %143 = arith.mulf %140, %142 : vector<2x256xf32>
    %144 = arith.addf %132, %143 : vector<2x256xf32>
    %c47 = arith.constant 47 : index
    %145 = memref.load %arg2[%c47] : memref<72xf32, #tpu.memory_space<smem>>
    %146 = vector.broadcast %145 : f32 to vector<2x256xf32>
    %147 = arith.mulf %140, %146 : vector<2x256xf32>
    %148 = arith.addf %136, %147 : vector<2x256xf32>
    %c1_i32_30 = arith.constant 1 : i32
    %149 = tpu.dynamic_rotate %112 by %c1_i32_30 dim 1 : vector<2x256xf32>, i32 -> vector<2x256xf32>
    %c3_31 = arith.constant 3 : index
    %c0_32 = arith.constant 0 : index
    %150 = vector.load %arg1[%c3_31, %c0_32] : memref<9x256xf32, #tpu.memory_space<vmem>>, vector<1x256xf32>
    %151 = vector.broadcast %150 : vector<1x256xf32> to vector<2x256xf32>
    %152 = arith.mulf %149, %151 : vector<2x256xf32>
    %c12 = arith.constant 12 : index
    %153 = memref.load %arg2[%c12] : memref<72xf32, #tpu.memory_space<smem>>
    %154 = vector.broadcast %153 : f32 to vector<2x256xf32>
    %155 = arith.mulf %152, %154 : vector<2x256xf32>
    %156 = arith.addf %144, %155 : vector<2x256xf32>
    %c48 = arith.constant 48 : index
    %157 = memref.load %arg2[%c48] : memref<72xf32, #tpu.memory_space<smem>>
    %158 = vector.broadcast %157 : f32 to vector<2x256xf32>
    %159 = arith.mulf %152, %158 : vector<2x256xf32>
    %160 = arith.addf %148, %159 : vector<2x256xf32>
    %c13 = arith.constant 13 : index
    %161 = memref.load %arg2[%c13] : memref<72xf32, #tpu.memory_space<smem>>
    %162 = vector.broadcast %161 : f32 to vector<2x256xf32>
    %163 = arith.mulf %112, %162 : vector<2x256xf32>
    %164 = arith.addf %156, %163 : vector<2x256xf32>
    %c49 = arith.constant 49 : index
    %165 = memref.load %arg2[%c49] : memref<72xf32, #tpu.memory_space<smem>>
    %166 = vector.broadcast %165 : f32 to vector<2x256xf32>
    %167 = arith.mulf %112, %166 : vector<2x256xf32>
    %168 = arith.addf %160, %167 : vector<2x256xf32>
    %c255_i32_33 = arith.constant 255 : i32
    %169 = tpu.dynamic_rotate %112 by %c255_i32_33 dim 1 : vector<2x256xf32>, i32 -> vector<2x256xf32>
    %c5_34 = arith.constant 5 : index
    %c0_35 = arith.constant 0 : index
    %170 = vector.load %arg1[%c5_34, %c0_35] : memref<9x256xf32, #tpu.memory_space<vmem>>, vector<1x256xf32>
    %171 = vector.broadcast %170 : vector<1x256xf32> to vector<2x256xf32>
    %172 = arith.mulf %169, %171 : vector<2x256xf32>
    %c14 = arith.constant 14 : index
    %173 = memref.load %arg2[%c14] : memref<72xf32, #tpu.memory_space<smem>>
    %174 = vector.broadcast %173 : f32 to vector<2x256xf32>
    %175 = arith.mulf %172, %174 : vector<2x256xf32>
    %176 = arith.addf %164, %175 : vector<2x256xf32>
    %c50 = arith.constant 50 : index
    %177 = memref.load %arg2[%c50] : memref<72xf32, #tpu.memory_space<smem>>
    %178 = vector.broadcast %177 : f32 to vector<2x256xf32>
    %179 = arith.mulf %172, %178 : vector<2x256xf32>
    %180 = arith.addf %168, %179 : vector<2x256xf32>
    %c241_i32_36 = arith.constant 241 : i32
    %181 = tpu.dynamic_rotate %112 by %c241_i32_36 dim 1 : vector<2x256xf32>, i32 -> vector<2x256xf32>
    %c6_37 = arith.constant 6 : index
    %c0_38 = arith.constant 0 : index
    %182 = vector.load %arg1[%c6_37, %c0_38] : memref<9x256xf32, #tpu.memory_space<vmem>>, vector<1x256xf32>
    %183 = vector.broadcast %182 : vector<1x256xf32> to vector<2x256xf32>
    %184 = arith.mulf %181, %183 : vector<2x256xf32>
    %c15 = arith.constant 15 : index
    %185 = memref.load %arg2[%c15] : memref<72xf32, #tpu.memory_space<smem>>
    %186 = vector.broadcast %185 : f32 to vector<2x256xf32>
    %187 = arith.mulf %184, %186 : vector<2x256xf32>
    %188 = arith.addf %176, %187 : vector<2x256xf32>
    %c51 = arith.constant 51 : index
    %189 = memref.load %arg2[%c51] : memref<72xf32, #tpu.memory_space<smem>>
    %190 = vector.broadcast %189 : f32 to vector<2x256xf32>
    %191 = arith.mulf %184, %190 : vector<2x256xf32>
    %192 = arith.addf %180, %191 : vector<2x256xf32>
    %c240_i32_39 = arith.constant 240 : i32
    %193 = tpu.dynamic_rotate %112 by %c240_i32_39 dim 1 : vector<2x256xf32>, i32 -> vector<2x256xf32>
    %c7_40 = arith.constant 7 : index
    %c0_41 = arith.constant 0 : index
    %194 = vector.load %arg1[%c7_40, %c0_41] : memref<9x256xf32, #tpu.memory_space<vmem>>, vector<1x256xf32>
    %195 = vector.broadcast %194 : vector<1x256xf32> to vector<2x256xf32>
    %196 = arith.mulf %193, %195 : vector<2x256xf32>
    %c16 = arith.constant 16 : index
    %197 = memref.load %arg2[%c16] : memref<72xf32, #tpu.memory_space<smem>>
    %198 = vector.broadcast %197 : f32 to vector<2x256xf32>
    %199 = arith.mulf %196, %198 : vector<2x256xf32>
    %200 = arith.addf %188, %199 : vector<2x256xf32>
    %c52 = arith.constant 52 : index
    %201 = memref.load %arg2[%c52] : memref<72xf32, #tpu.memory_space<smem>>
    %202 = vector.broadcast %201 : f32 to vector<2x256xf32>
    %203 = arith.mulf %196, %202 : vector<2x256xf32>
    %204 = arith.addf %192, %203 : vector<2x256xf32>
    %c239_i32_42 = arith.constant 239 : i32
    %205 = tpu.dynamic_rotate %112 by %c239_i32_42 dim 1 : vector<2x256xf32>, i32 -> vector<2x256xf32>
    %c8_43 = arith.constant 8 : index
    %c0_44 = arith.constant 0 : index
    %206 = vector.load %arg1[%c8_43, %c0_44] : memref<9x256xf32, #tpu.memory_space<vmem>>, vector<1x256xf32>
    %207 = vector.broadcast %206 : vector<1x256xf32> to vector<2x256xf32>
    %208 = arith.mulf %205, %207 : vector<2x256xf32>
    %c17 = arith.constant 17 : index
    %209 = memref.load %arg2[%c17] : memref<72xf32, #tpu.memory_space<smem>>
    %210 = vector.broadcast %209 : f32 to vector<2x256xf32>
    %211 = arith.mulf %208, %210 : vector<2x256xf32>
    %212 = arith.addf %200, %211 : vector<2x256xf32>
    %c53 = arith.constant 53 : index
    %213 = memref.load %arg2[%c53] : memref<72xf32, #tpu.memory_space<smem>>
    %214 = vector.broadcast %213 : f32 to vector<2x256xf32>
    %215 = arith.mulf %208, %214 : vector<2x256xf32>
    %216 = arith.addf %204, %215 : vector<2x256xf32>
    %217 = vector.extract_strided_slice %0 {offsets = [0, 2, 0], sizes = [2, 1, 256], strides = [1, 1, 1]} : vector<2x4x256xf32> to vector<2x1x256xf32>
    %218 = vector.shape_cast %217 : vector<2x1x256xf32> to vector<2x256xf32>
    %c17_i32_45 = arith.constant 17 : i32
    %219 = tpu.dynamic_rotate %218 by %c17_i32_45 dim 1 : vector<2x256xf32>, i32 -> vector<2x256xf32>
    %c0_46 = arith.constant 0 : index
    %c0_47 = arith.constant 0 : index
    %220 = vector.load %arg1[%c0_46, %c0_47] : memref<9x256xf32, #tpu.memory_space<vmem>>, vector<1x256xf32>
    %221 = vector.broadcast %220 : vector<1x256xf32> to vector<2x256xf32>
    %222 = arith.mulf %219, %221 : vector<2x256xf32>
    %c18 = arith.constant 18 : index
    %223 = memref.load %arg2[%c18] : memref<72xf32, #tpu.memory_space<smem>>
    %224 = vector.broadcast %223 : f32 to vector<2x256xf32>
    %225 = arith.mulf %222, %224 : vector<2x256xf32>
    %226 = arith.addf %212, %225 : vector<2x256xf32>
    %c54 = arith.constant 54 : index
    %227 = memref.load %arg2[%c54] : memref<72xf32, #tpu.memory_space<smem>>
    %228 = vector.broadcast %227 : f32 to vector<2x256xf32>
    %229 = arith.mulf %222, %228 : vector<2x256xf32>
    %230 = arith.addf %216, %229 : vector<2x256xf32>
    %c16_i32_48 = arith.constant 16 : i32
    %231 = tpu.dynamic_rotate %218 by %c16_i32_48 dim 1 : vector<2x256xf32>, i32 -> vector<2x256xf32>
    %c1_49 = arith.constant 1 : index
    %c0_50 = arith.constant 0 : index
    %232 = vector.load %arg1[%c1_49, %c0_50] : memref<9x256xf32, #tpu.memory_space<vmem>>, vector<1x256xf32>
    %233 = vector.broadcast %232 : vector<1x256xf32> to vector<2x256xf32>
    %234 = arith.mulf %231, %233 : vector<2x256xf32>
    %c19 = arith.constant 19 : index
    %235 = memref.load %arg2[%c19] : memref<72xf32, #tpu.memory_space<smem>>
    %236 = vector.broadcast %235 : f32 to vector<2x256xf32>
    %237 = arith.mulf %234, %236 : vector<2x256xf32>
    %238 = arith.addf %226, %237 : vector<2x256xf32>
    %c55 = arith.constant 55 : index
    %239 = memref.load %arg2[%c55] : memref<72xf32, #tpu.memory_space<smem>>
    %240 = vector.broadcast %239 : f32 to vector<2x256xf32>
    %241 = arith.mulf %234, %240 : vector<2x256xf32>
    %242 = arith.addf %230, %241 : vector<2x256xf32>
    %c15_i32_51 = arith.constant 15 : i32
    %243 = tpu.dynamic_rotate %218 by %c15_i32_51 dim 1 : vector<2x256xf32>, i32 -> vector<2x256xf32>
    %c2_52 = arith.constant 2 : index
    %c0_53 = arith.constant 0 : index
    %244 = vector.load %arg1[%c2_52, %c0_53] : memref<9x256xf32, #tpu.memory_space<vmem>>, vector<1x256xf32>
    %245 = vector.broadcast %244 : vector<1x256xf32> to vector<2x256xf32>
    %246 = arith.mulf %243, %245 : vector<2x256xf32>
    %c20 = arith.constant 20 : index
    %247 = memref.load %arg2[%c20] : memref<72xf32, #tpu.memory_space<smem>>
    %248 = vector.broadcast %247 : f32 to vector<2x256xf32>
    %249 = arith.mulf %246, %248 : vector<2x256xf32>
    %250 = arith.addf %238, %249 : vector<2x256xf32>
    %c56 = arith.constant 56 : index
    %251 = memref.load %arg2[%c56] : memref<72xf32, #tpu.memory_space<smem>>
    %252 = vector.broadcast %251 : f32 to vector<2x256xf32>
    %253 = arith.mulf %246, %252 : vector<2x256xf32>
    %254 = arith.addf %242, %253 : vector<2x256xf32>
    %c1_i32_54 = arith.constant 1 : i32
    %255 = tpu.dynamic_rotate %218 by %c1_i32_54 dim 1 : vector<2x256xf32>, i32 -> vector<2x256xf32>
    %c3_55 = arith.constant 3 : index
    %c0_56 = arith.constant 0 : index
    %256 = vector.load %arg1[%c3_55, %c0_56] : memref<9x256xf32, #tpu.memory_space<vmem>>, vector<1x256xf32>
    %257 = vector.broadcast %256 : vector<1x256xf32> to vector<2x256xf32>
    %258 = arith.mulf %255, %257 : vector<2x256xf32>
    %c21 = arith.constant 21 : index
    %259 = memref.load %arg2[%c21] : memref<72xf32, #tpu.memory_space<smem>>
    %260 = vector.broadcast %259 : f32 to vector<2x256xf32>
    %261 = arith.mulf %258, %260 : vector<2x256xf32>
    %262 = arith.addf %250, %261 : vector<2x256xf32>
    %c57 = arith.constant 57 : index
    %263 = memref.load %arg2[%c57] : memref<72xf32, #tpu.memory_space<smem>>
    %264 = vector.broadcast %263 : f32 to vector<2x256xf32>
    %265 = arith.mulf %258, %264 : vector<2x256xf32>
    %266 = arith.addf %254, %265 : vector<2x256xf32>
    %c22 = arith.constant 22 : index
    %267 = memref.load %arg2[%c22] : memref<72xf32, #tpu.memory_space<smem>>
    %268 = vector.broadcast %267 : f32 to vector<2x256xf32>
    %269 = arith.mulf %218, %268 : vector<2x256xf32>
    %270 = arith.addf %262, %269 : vector<2x256xf32>
    %c58 = arith.constant 58 : index
    %271 = memref.load %arg2[%c58] : memref<72xf32, #tpu.memory_space<smem>>
    %272 = vector.broadcast %271 : f32 to vector<2x256xf32>
    %273 = arith.mulf %218, %272 : vector<2x256xf32>
    %274 = arith.addf %266, %273 : vector<2x256xf32>
    %c255_i32_57 = arith.constant 255 : i32
    %275 = tpu.dynamic_rotate %218 by %c255_i32_57 dim 1 : vector<2x256xf32>, i32 -> vector<2x256xf32>
    %c5_58 = arith.constant 5 : index
    %c0_59 = arith.constant 0 : index
    %276 = vector.load %arg1[%c5_58, %c0_59] : memref<9x256xf32, #tpu.memory_space<vmem>>, vector<1x256xf32>
    %277 = vector.broadcast %276 : vector<1x256xf32> to vector<2x256xf32>
    %278 = arith.mulf %275, %277 : vector<2x256xf32>
    %c23 = arith.constant 23 : index
    %279 = memref.load %arg2[%c23] : memref<72xf32, #tpu.memory_space<smem>>
    %280 = vector.broadcast %279 : f32 to vector<2x256xf32>
    %281 = arith.mulf %278, %280 : vector<2x256xf32>
    %282 = arith.addf %270, %281 : vector<2x256xf32>
    %c59 = arith.constant 59 : index
    %283 = memref.load %arg2[%c59] : memref<72xf32, #tpu.memory_space<smem>>
    %284 = vector.broadcast %283 : f32 to vector<2x256xf32>
    %285 = arith.mulf %278, %284 : vector<2x256xf32>
    %286 = arith.addf %274, %285 : vector<2x256xf32>
    %c241_i32_60 = arith.constant 241 : i32
    %287 = tpu.dynamic_rotate %218 by %c241_i32_60 dim 1 : vector<2x256xf32>, i32 -> vector<2x256xf32>
    %c6_61 = arith.constant 6 : index
    %c0_62 = arith.constant 0 : index
    %288 = vector.load %arg1[%c6_61, %c0_62] : memref<9x256xf32, #tpu.memory_space<vmem>>, vector<1x256xf32>
    %289 = vector.broadcast %288 : vector<1x256xf32> to vector<2x256xf32>
    %290 = arith.mulf %287, %289 : vector<2x256xf32>
    %c24 = arith.constant 24 : index
    %291 = memref.load %arg2[%c24] : memref<72xf32, #tpu.memory_space<smem>>
    %292 = vector.broadcast %291 : f32 to vector<2x256xf32>
    %293 = arith.mulf %290, %292 : vector<2x256xf32>
    %294 = arith.addf %282, %293 : vector<2x256xf32>
    %c60 = arith.constant 60 : index
    %295 = memref.load %arg2[%c60] : memref<72xf32, #tpu.memory_space<smem>>
    %296 = vector.broadcast %295 : f32 to vector<2x256xf32>
    %297 = arith.mulf %290, %296 : vector<2x256xf32>
    %298 = arith.addf %286, %297 : vector<2x256xf32>
    %c240_i32_63 = arith.constant 240 : i32
    %299 = tpu.dynamic_rotate %218 by %c240_i32_63 dim 1 : vector<2x256xf32>, i32 -> vector<2x256xf32>
    %c7_64 = arith.constant 7 : index
    %c0_65 = arith.constant 0 : index
    %300 = vector.load %arg1[%c7_64, %c0_65] : memref<9x256xf32, #tpu.memory_space<vmem>>, vector<1x256xf32>
    %301 = vector.broadcast %300 : vector<1x256xf32> to vector<2x256xf32>
    %302 = arith.mulf %299, %301 : vector<2x256xf32>
    %c25 = arith.constant 25 : index
    %303 = memref.load %arg2[%c25] : memref<72xf32, #tpu.memory_space<smem>>
    %304 = vector.broadcast %303 : f32 to vector<2x256xf32>
    %305 = arith.mulf %302, %304 : vector<2x256xf32>
    %306 = arith.addf %294, %305 : vector<2x256xf32>
    %c61 = arith.constant 61 : index
    %307 = memref.load %arg2[%c61] : memref<72xf32, #tpu.memory_space<smem>>
    %308 = vector.broadcast %307 : f32 to vector<2x256xf32>
    %309 = arith.mulf %302, %308 : vector<2x256xf32>
    %310 = arith.addf %298, %309 : vector<2x256xf32>
    %c239_i32_66 = arith.constant 239 : i32
    %311 = tpu.dynamic_rotate %218 by %c239_i32_66 dim 1 : vector<2x256xf32>, i32 -> vector<2x256xf32>
    %c8_67 = arith.constant 8 : index
    %c0_68 = arith.constant 0 : index
    %312 = vector.load %arg1[%c8_67, %c0_68] : memref<9x256xf32, #tpu.memory_space<vmem>>, vector<1x256xf32>
    %313 = vector.broadcast %312 : vector<1x256xf32> to vector<2x256xf32>
    %314 = arith.mulf %311, %313 : vector<2x256xf32>
    %c26 = arith.constant 26 : index
    %315 = memref.load %arg2[%c26] : memref<72xf32, #tpu.memory_space<smem>>
    %316 = vector.broadcast %315 : f32 to vector<2x256xf32>
    %317 = arith.mulf %314, %316 : vector<2x256xf32>
    %318 = arith.addf %306, %317 : vector<2x256xf32>
    %c62 = arith.constant 62 : index
    %319 = memref.load %arg2[%c62] : memref<72xf32, #tpu.memory_space<smem>>
    %320 = vector.broadcast %319 : f32 to vector<2x256xf32>
    %321 = arith.mulf %314, %320 : vector<2x256xf32>
    %322 = arith.addf %310, %321 : vector<2x256xf32>
    %323 = vector.extract_strided_slice %0 {offsets = [0, 3, 0], sizes = [2, 1, 256], strides = [1, 1, 1]} : vector<2x4x256xf32> to vector<2x1x256xf32>
    %324 = vector.shape_cast %323 : vector<2x1x256xf32> to vector<2x256xf32>
    %c17_i32_69 = arith.constant 17 : i32
    %325 = tpu.dynamic_rotate %324 by %c17_i32_69 dim 1 : vector<2x256xf32>, i32 -> vector<2x256xf32>
    %c0_70 = arith.constant 0 : index
    %c0_71 = arith.constant 0 : index
    %326 = vector.load %arg1[%c0_70, %c0_71] : memref<9x256xf32, #tpu.memory_space<vmem>>, vector<1x256xf32>
    %327 = vector.broadcast %326 : vector<1x256xf32> to vector<2x256xf32>
    %328 = arith.mulf %325, %327 : vector<2x256xf32>
    %c27 = arith.constant 27 : index
    %329 = memref.load %arg2[%c27] : memref<72xf32, #tpu.memory_space<smem>>
    %330 = vector.broadcast %329 : f32 to vector<2x256xf32>
    %331 = arith.mulf %328, %330 : vector<2x256xf32>
    %332 = arith.addf %318, %331 : vector<2x256xf32>
    %c63 = arith.constant 63 : index
    %333 = memref.load %arg2[%c63] : memref<72xf32, #tpu.memory_space<smem>>
    %334 = vector.broadcast %333 : f32 to vector<2x256xf32>
    %335 = arith.mulf %328, %334 : vector<2x256xf32>
    %336 = arith.addf %322, %335 : vector<2x256xf32>
    %c16_i32_72 = arith.constant 16 : i32
    %337 = tpu.dynamic_rotate %324 by %c16_i32_72 dim 1 : vector<2x256xf32>, i32 -> vector<2x256xf32>
    %c1_73 = arith.constant 1 : index
    %c0_74 = arith.constant 0 : index
    %338 = vector.load %arg1[%c1_73, %c0_74] : memref<9x256xf32, #tpu.memory_space<vmem>>, vector<1x256xf32>
    %339 = vector.broadcast %338 : vector<1x256xf32> to vector<2x256xf32>
    %340 = arith.mulf %337, %339 : vector<2x256xf32>
    %c28 = arith.constant 28 : index
    %341 = memref.load %arg2[%c28] : memref<72xf32, #tpu.memory_space<smem>>
    %342 = vector.broadcast %341 : f32 to vector<2x256xf32>
    %343 = arith.mulf %340, %342 : vector<2x256xf32>
    %344 = arith.addf %332, %343 : vector<2x256xf32>
    %c64 = arith.constant 64 : index
    %345 = memref.load %arg2[%c64] : memref<72xf32, #tpu.memory_space<smem>>
    %346 = vector.broadcast %345 : f32 to vector<2x256xf32>
    %347 = arith.mulf %340, %346 : vector<2x256xf32>
    %348 = arith.addf %336, %347 : vector<2x256xf32>
    %c15_i32_75 = arith.constant 15 : i32
    %349 = tpu.dynamic_rotate %324 by %c15_i32_75 dim 1 : vector<2x256xf32>, i32 -> vector<2x256xf32>
    %c2_76 = arith.constant 2 : index
    %c0_77 = arith.constant 0 : index
    %350 = vector.load %arg1[%c2_76, %c0_77] : memref<9x256xf32, #tpu.memory_space<vmem>>, vector<1x256xf32>
    %351 = vector.broadcast %350 : vector<1x256xf32> to vector<2x256xf32>
    %352 = arith.mulf %349, %351 : vector<2x256xf32>
    %c29 = arith.constant 29 : index
    %353 = memref.load %arg2[%c29] : memref<72xf32, #tpu.memory_space<smem>>
    %354 = vector.broadcast %353 : f32 to vector<2x256xf32>
    %355 = arith.mulf %352, %354 : vector<2x256xf32>
    %356 = arith.addf %344, %355 : vector<2x256xf32>
    %c65 = arith.constant 65 : index
    %357 = memref.load %arg2[%c65] : memref<72xf32, #tpu.memory_space<smem>>
    %358 = vector.broadcast %357 : f32 to vector<2x256xf32>
    %359 = arith.mulf %352, %358 : vector<2x256xf32>
    %360 = arith.addf %348, %359 : vector<2x256xf32>
    %c1_i32_78 = arith.constant 1 : i32
    %361 = tpu.dynamic_rotate %324 by %c1_i32_78 dim 1 : vector<2x256xf32>, i32 -> vector<2x256xf32>
    %c3_79 = arith.constant 3 : index
    %c0_80 = arith.constant 0 : index
    %362 = vector.load %arg1[%c3_79, %c0_80] : memref<9x256xf32, #tpu.memory_space<vmem>>, vector<1x256xf32>
    %363 = vector.broadcast %362 : vector<1x256xf32> to vector<2x256xf32>
    %364 = arith.mulf %361, %363 : vector<2x256xf32>
    %c30 = arith.constant 30 : index
    %365 = memref.load %arg2[%c30] : memref<72xf32, #tpu.memory_space<smem>>
    %366 = vector.broadcast %365 : f32 to vector<2x256xf32>
    %367 = arith.mulf %364, %366 : vector<2x256xf32>
    %368 = arith.addf %356, %367 : vector<2x256xf32>
    %c66 = arith.constant 66 : index
    %369 = memref.load %arg2[%c66] : memref<72xf32, #tpu.memory_space<smem>>
    %370 = vector.broadcast %369 : f32 to vector<2x256xf32>
    %371 = arith.mulf %364, %370 : vector<2x256xf32>
    %372 = arith.addf %360, %371 : vector<2x256xf32>
    %c31 = arith.constant 31 : index
    %373 = memref.load %arg2[%c31] : memref<72xf32, #tpu.memory_space<smem>>
    %374 = vector.broadcast %373 : f32 to vector<2x256xf32>
    %375 = arith.mulf %324, %374 : vector<2x256xf32>
    %376 = arith.addf %368, %375 : vector<2x256xf32>
    %c67 = arith.constant 67 : index
    %377 = memref.load %arg2[%c67] : memref<72xf32, #tpu.memory_space<smem>>
    %378 = vector.broadcast %377 : f32 to vector<2x256xf32>
    %379 = arith.mulf %324, %378 : vector<2x256xf32>
    %380 = arith.addf %372, %379 : vector<2x256xf32>
    %c255_i32_81 = arith.constant 255 : i32
    %381 = tpu.dynamic_rotate %324 by %c255_i32_81 dim 1 : vector<2x256xf32>, i32 -> vector<2x256xf32>
    %c5_82 = arith.constant 5 : index
    %c0_83 = arith.constant 0 : index
    %382 = vector.load %arg1[%c5_82, %c0_83] : memref<9x256xf32, #tpu.memory_space<vmem>>, vector<1x256xf32>
    %383 = vector.broadcast %382 : vector<1x256xf32> to vector<2x256xf32>
    %384 = arith.mulf %381, %383 : vector<2x256xf32>
    %c32 = arith.constant 32 : index
    %385 = memref.load %arg2[%c32] : memref<72xf32, #tpu.memory_space<smem>>
    %386 = vector.broadcast %385 : f32 to vector<2x256xf32>
    %387 = arith.mulf %384, %386 : vector<2x256xf32>
    %388 = arith.addf %376, %387 : vector<2x256xf32>
    %c68 = arith.constant 68 : index
    %389 = memref.load %arg2[%c68] : memref<72xf32, #tpu.memory_space<smem>>
    %390 = vector.broadcast %389 : f32 to vector<2x256xf32>
    %391 = arith.mulf %384, %390 : vector<2x256xf32>
    %392 = arith.addf %380, %391 : vector<2x256xf32>
    %c241_i32_84 = arith.constant 241 : i32
    %393 = tpu.dynamic_rotate %324 by %c241_i32_84 dim 1 : vector<2x256xf32>, i32 -> vector<2x256xf32>
    %c6_85 = arith.constant 6 : index
    %c0_86 = arith.constant 0 : index
    %394 = vector.load %arg1[%c6_85, %c0_86] : memref<9x256xf32, #tpu.memory_space<vmem>>, vector<1x256xf32>
    %395 = vector.broadcast %394 : vector<1x256xf32> to vector<2x256xf32>
    %396 = arith.mulf %393, %395 : vector<2x256xf32>
    %c33 = arith.constant 33 : index
    %397 = memref.load %arg2[%c33] : memref<72xf32, #tpu.memory_space<smem>>
    %398 = vector.broadcast %397 : f32 to vector<2x256xf32>
    %399 = arith.mulf %396, %398 : vector<2x256xf32>
    %400 = arith.addf %388, %399 : vector<2x256xf32>
    %c69 = arith.constant 69 : index
    %401 = memref.load %arg2[%c69] : memref<72xf32, #tpu.memory_space<smem>>
    %402 = vector.broadcast %401 : f32 to vector<2x256xf32>
    %403 = arith.mulf %396, %402 : vector<2x256xf32>
    %404 = arith.addf %392, %403 : vector<2x256xf32>
    %c240_i32_87 = arith.constant 240 : i32
    %405 = tpu.dynamic_rotate %324 by %c240_i32_87 dim 1 : vector<2x256xf32>, i32 -> vector<2x256xf32>
    %c7_88 = arith.constant 7 : index
    %c0_89 = arith.constant 0 : index
    %406 = vector.load %arg1[%c7_88, %c0_89] : memref<9x256xf32, #tpu.memory_space<vmem>>, vector<1x256xf32>
    %407 = vector.broadcast %406 : vector<1x256xf32> to vector<2x256xf32>
    %408 = arith.mulf %405, %407 : vector<2x256xf32>
    %c34 = arith.constant 34 : index
    %409 = memref.load %arg2[%c34] : memref<72xf32, #tpu.memory_space<smem>>
    %410 = vector.broadcast %409 : f32 to vector<2x256xf32>
    %411 = arith.mulf %408, %410 : vector<2x256xf32>
    %412 = arith.addf %400, %411 : vector<2x256xf32>
    %c70 = arith.constant 70 : index
    %413 = memref.load %arg2[%c70] : memref<72xf32, #tpu.memory_space<smem>>
    %414 = vector.broadcast %413 : f32 to vector<2x256xf32>
    %415 = arith.mulf %408, %414 : vector<2x256xf32>
    %416 = arith.addf %404, %415 : vector<2x256xf32>
    %c239_i32_90 = arith.constant 239 : i32
    %417 = tpu.dynamic_rotate %324 by %c239_i32_90 dim 1 : vector<2x256xf32>, i32 -> vector<2x256xf32>
    %c8_91 = arith.constant 8 : index
    %c0_92 = arith.constant 0 : index
    %418 = vector.load %arg1[%c8_91, %c0_92] : memref<9x256xf32, #tpu.memory_space<vmem>>, vector<1x256xf32>
    %419 = vector.broadcast %418 : vector<1x256xf32> to vector<2x256xf32>
    %420 = arith.mulf %417, %419 : vector<2x256xf32>
    %c35 = arith.constant 35 : index
    %421 = memref.load %arg2[%c35] : memref<72xf32, #tpu.memory_space<smem>>
    %422 = vector.broadcast %421 : f32 to vector<2x256xf32>
    %423 = arith.mulf %420, %422 : vector<2x256xf32>
    %424 = arith.addf %412, %423 : vector<2x256xf32>
    %c71 = arith.constant 71 : index
    %425 = memref.load %arg2[%c71] : memref<72xf32, #tpu.memory_space<smem>>
    %426 = vector.broadcast %425 : f32 to vector<2x256xf32>
    %427 = arith.mulf %420, %426 : vector<2x256xf32>
    %428 = arith.addf %416, %427 : vector<2x256xf32>
    %429 = vector.shape_cast %424 : vector<2x256xf32> to vector<1x2x256xf32>
    %cst = arith.constant dense<0.000000e+00> : vector<1xf32>
    %430 = vector.multi_reduction <add>, %429, %cst [1, 2] : vector<1x2x256xf32> to vector<1xf32>
    %431 = vector.shape_cast %430 : vector<1xf32> to vector<1x1x1xf32>
    %432 = vector.extract %431[0, 0, 0] : f32 from vector<1x1x1xf32>
    %433 = vector.broadcast %432 : f32 to vector<1x1xf32>
    %cst_93 = arith.constant 0.001953125 : f32
    %434 = vector.broadcast %cst_93 : f32 to vector<1x1xf32>
    %435 = arith.mulf %433, %434 : vector<1x1xf32>
    %436 = arith.mulf %424, %424 : vector<2x256xf32>
    %437 = vector.shape_cast %436 : vector<2x256xf32> to vector<1x2x256xf32>
    %cst_94 = arith.constant dense<0.000000e+00> : vector<1xf32>
    %438 = vector.multi_reduction <add>, %437, %cst_94 [1, 2] : vector<1x2x256xf32> to vector<1xf32>
    %439 = vector.shape_cast %438 : vector<1xf32> to vector<1x1x1xf32>
    %440 = vector.extract %439[0, 0, 0] : f32 from vector<1x1x1xf32>
    %441 = vector.broadcast %440 : f32 to vector<1x1xf32>
    %cst_95 = arith.constant 0.001953125 : f32
    %442 = vector.broadcast %cst_95 : f32 to vector<1x1xf32>
    %443 = arith.mulf %441, %442 : vector<1x1xf32>
    %444 = arith.mulf %435, %435 : vector<1x1xf32>
    %445 = arith.subf %443, %444 : vector<1x1xf32>
    %c0_96 = arith.constant 0 : index
    %446 = memref.load %arg4[%c0_96] : memref<2xf32, #tpu.memory_space<smem>>
    %cst_97 = arith.constant 9.99999974E-6 : f32
    %447 = vector.broadcast %cst_97 : f32 to vector<1x1xf32>
    %448 = arith.addf %445, %447 : vector<1x1xf32>
    %449 = math.rsqrt %448 : vector<1x1xf32>
    %450 = vector.broadcast %446 : f32 to vector<1x1xf32>
    %451 = arith.mulf %450, %449 : vector<1x1xf32>
    %452 = vector.broadcast %435 : vector<1x1xf32> to vector<2x256xf32>
    %453 = arith.subf %424, %452 : vector<2x256xf32>
    %454 = vector.broadcast %451 : vector<1x1xf32> to vector<2x256xf32>
    %455 = arith.mulf %453, %454 : vector<2x256xf32>
    %c0_98 = arith.constant 0 : index
    %456 = memref.load %arg5[%c0_98] : memref<2xf32, #tpu.memory_space<smem>>
    %457 = vector.broadcast %456 : f32 to vector<2x256xf32>
    %458 = arith.addf %455, %457 : vector<2x256xf32>
    %cst_99 = arith.constant 0.000000e+00 : f32
    %459 = vector.broadcast %cst_99 : f32 to vector<2x256xf32>
    %460 = arith.maximumf %458, %459 : vector<2x256xf32>
    %461 = vector.shape_cast %428 : vector<2x256xf32> to vector<1x2x256xf32>
    %cst_100 = arith.constant dense<0.000000e+00> : vector<1xf32>
    %462 = vector.multi_reduction <add>, %461, %cst_100 [1, 2] : vector<1x2x256xf32> to vector<1xf32>
    %463 = vector.shape_cast %462 : vector<1xf32> to vector<1x1x1xf32>
    %464 = vector.extract %463[0, 0, 0] : f32 from vector<1x1x1xf32>
    %465 = vector.broadcast %464 : f32 to vector<1x1xf32>
    %cst_101 = arith.constant 0.001953125 : f32
    %466 = vector.broadcast %cst_101 : f32 to vector<1x1xf32>
    %467 = arith.mulf %465, %466 : vector<1x1xf32>
    %468 = arith.mulf %428, %428 : vector<2x256xf32>
    %469 = vector.shape_cast %468 : vector<2x256xf32> to vector<1x2x256xf32>
    %cst_102 = arith.constant dense<0.000000e+00> : vector<1xf32>
    %470 = vector.multi_reduction <add>, %469, %cst_102 [1, 2] : vector<1x2x256xf32> to vector<1xf32>
    %471 = vector.shape_cast %470 : vector<1xf32> to vector<1x1x1xf32>
    %472 = vector.extract %471[0, 0, 0] : f32 from vector<1x1x1xf32>
    %473 = vector.broadcast %472 : f32 to vector<1x1xf32>
    %cst_103 = arith.constant 0.001953125 : f32
    %474 = vector.broadcast %cst_103 : f32 to vector<1x1xf32>
    %475 = arith.mulf %473, %474 : vector<1x1xf32>
    %476 = arith.mulf %467, %467 : vector<1x1xf32>
    %477 = arith.subf %475, %476 : vector<1x1xf32>
    %c1_104 = arith.constant 1 : index
    %478 = memref.load %arg4[%c1_104] : memref<2xf32, #tpu.memory_space<smem>>
    %cst_105 = arith.constant 9.99999974E-6 : f32
    %479 = vector.broadcast %cst_105 : f32 to vector<1x1xf32>
    %480 = arith.addf %477, %479 : vector<1x1xf32>
    %481 = math.rsqrt %480 : vector<1x1xf32>
    %482 = vector.broadcast %478 : f32 to vector<1x1xf32>
    %483 = arith.mulf %482, %481 : vector<1x1xf32>
    %484 = vector.broadcast %467 : vector<1x1xf32> to vector<2x256xf32>
    %485 = arith.subf %428, %484 : vector<2x256xf32>
    %486 = vector.broadcast %483 : vector<1x1xf32> to vector<2x256xf32>
    %487 = arith.mulf %485, %486 : vector<2x256xf32>
    %c1_106 = arith.constant 1 : index
    %488 = memref.load %arg5[%c1_106] : memref<2xf32, #tpu.memory_space<smem>>
    %489 = vector.broadcast %488 : f32 to vector<2x256xf32>
    %490 = arith.addf %487, %489 : vector<2x256xf32>
    %cst_107 = arith.constant 0.000000e+00 : f32
    %491 = vector.broadcast %cst_107 : f32 to vector<2x256xf32>
    %492 = arith.maximumf %490, %491 : vector<2x256xf32>
    %c0_108 = arith.constant 0 : index
    %493 = memref.load %arg7[%c0_108] : memref<1xf32, #tpu.memory_space<smem>>
    %494 = vector.broadcast %493 : f32 to vector<2x256xf32>
    %c0_109 = arith.constant 0 : index
    %495 = memref.load %arg6[%c0_109] : memref<18xf32, #tpu.memory_space<smem>>
    %c17_i32_110 = arith.constant 17 : i32
    %496 = tpu.dynamic_rotate %460 by %c17_i32_110 dim 1 : vector<2x256xf32>, i32 -> vector<2x256xf32>
    %c0_111 = arith.constant 0 : index
    %c0_112 = arith.constant 0 : index
    %497 = vector.load %arg1[%c0_111, %c0_112] : memref<9x256xf32, #tpu.memory_space<vmem>>, vector<1x256xf32>
    %498 = vector.broadcast %497 : vector<1x256xf32> to vector<2x256xf32>
    %499 = arith.mulf %496, %498 : vector<2x256xf32>
    %500 = vector.broadcast %495 : f32 to vector<2x256xf32>
    %501 = arith.mulf %499, %500 : vector<2x256xf32>
    %502 = arith.addf %494, %501 : vector<2x256xf32>
    %c1_113 = arith.constant 1 : index
    %503 = memref.load %arg6[%c1_113] : memref<18xf32, #tpu.memory_space<smem>>
    %c16_i32_114 = arith.constant 16 : i32
    %504 = tpu.dynamic_rotate %460 by %c16_i32_114 dim 1 : vector<2x256xf32>, i32 -> vector<2x256xf32>
    %c1_115 = arith.constant 1 : index
    %c0_116 = arith.constant 0 : index
    %505 = vector.load %arg1[%c1_115, %c0_116] : memref<9x256xf32, #tpu.memory_space<vmem>>, vector<1x256xf32>
    %506 = vector.broadcast %505 : vector<1x256xf32> to vector<2x256xf32>
    %507 = arith.mulf %504, %506 : vector<2x256xf32>
    %508 = vector.broadcast %503 : f32 to vector<2x256xf32>
    %509 = arith.mulf %507, %508 : vector<2x256xf32>
    %510 = arith.addf %502, %509 : vector<2x256xf32>
    %c2_117 = arith.constant 2 : index
    %511 = memref.load %arg6[%c2_117] : memref<18xf32, #tpu.memory_space<smem>>
    %c15_i32_118 = arith.constant 15 : i32
    %512 = tpu.dynamic_rotate %460 by %c15_i32_118 dim 1 : vector<2x256xf32>, i32 -> vector<2x256xf32>
    %c2_119 = arith.constant 2 : index
    %c0_120 = arith.constant 0 : index
    %513 = vector.load %arg1[%c2_119, %c0_120] : memref<9x256xf32, #tpu.memory_space<vmem>>, vector<1x256xf32>
    %514 = vector.broadcast %513 : vector<1x256xf32> to vector<2x256xf32>
    %515 = arith.mulf %512, %514 : vector<2x256xf32>
    %516 = vector.broadcast %511 : f32 to vector<2x256xf32>
    %517 = arith.mulf %515, %516 : vector<2x256xf32>
    %518 = arith.addf %510, %517 : vector<2x256xf32>
    %c3_121 = arith.constant 3 : index
    %519 = memref.load %arg6[%c3_121] : memref<18xf32, #tpu.memory_space<smem>>
    %c1_i32_122 = arith.constant 1 : i32
    %520 = tpu.dynamic_rotate %460 by %c1_i32_122 dim 1 : vector<2x256xf32>, i32 -> vector<2x256xf32>
    %c3_123 = arith.constant 3 : index
    %c0_124 = arith.constant 0 : index
    %521 = vector.load %arg1[%c3_123, %c0_124] : memref<9x256xf32, #tpu.memory_space<vmem>>, vector<1x256xf32>
    %522 = vector.broadcast %521 : vector<1x256xf32> to vector<2x256xf32>
    %523 = arith.mulf %520, %522 : vector<2x256xf32>
    %524 = vector.broadcast %519 : f32 to vector<2x256xf32>
    %525 = arith.mulf %523, %524 : vector<2x256xf32>
    %526 = arith.addf %518, %525 : vector<2x256xf32>
    %c4_125 = arith.constant 4 : index
    %527 = memref.load %arg6[%c4_125] : memref<18xf32, #tpu.memory_space<smem>>
    %528 = vector.broadcast %527 : f32 to vector<2x256xf32>
    %529 = arith.mulf %460, %528 : vector<2x256xf32>
    %530 = arith.addf %526, %529 : vector<2x256xf32>
    %c5_126 = arith.constant 5 : index
    %531 = memref.load %arg6[%c5_126] : memref<18xf32, #tpu.memory_space<smem>>
    %c255_i32_127 = arith.constant 255 : i32
    %532 = tpu.dynamic_rotate %460 by %c255_i32_127 dim 1 : vector<2x256xf32>, i32 -> vector<2x256xf32>
    %c5_128 = arith.constant 5 : index
    %c0_129 = arith.constant 0 : index
    %533 = vector.load %arg1[%c5_128, %c0_129] : memref<9x256xf32, #tpu.memory_space<vmem>>, vector<1x256xf32>
    %534 = vector.broadcast %533 : vector<1x256xf32> to vector<2x256xf32>
    %535 = arith.mulf %532, %534 : vector<2x256xf32>
    %536 = vector.broadcast %531 : f32 to vector<2x256xf32>
    %537 = arith.mulf %535, %536 : vector<2x256xf32>
    %538 = arith.addf %530, %537 : vector<2x256xf32>
    %c6_130 = arith.constant 6 : index
    %539 = memref.load %arg6[%c6_130] : memref<18xf32, #tpu.memory_space<smem>>
    %c241_i32_131 = arith.constant 241 : i32
    %540 = tpu.dynamic_rotate %460 by %c241_i32_131 dim 1 : vector<2x256xf32>, i32 -> vector<2x256xf32>
    %c6_132 = arith.constant 6 : index
    %c0_133 = arith.constant 0 : index
    %541 = vector.load %arg1[%c6_132, %c0_133] : memref<9x256xf32, #tpu.memory_space<vmem>>, vector<1x256xf32>
    %542 = vector.broadcast %541 : vector<1x256xf32> to vector<2x256xf32>
    %543 = arith.mulf %540, %542 : vector<2x256xf32>
    %544 = vector.broadcast %539 : f32 to vector<2x256xf32>
    %545 = arith.mulf %543, %544 : vector<2x256xf32>
    %546 = arith.addf %538, %545 : vector<2x256xf32>
    %c7_134 = arith.constant 7 : index
    %547 = memref.load %arg6[%c7_134] : memref<18xf32, #tpu.memory_space<smem>>
    %c240_i32_135 = arith.constant 240 : i32
    %548 = tpu.dynamic_rotate %460 by %c240_i32_135 dim 1 : vector<2x256xf32>, i32 -> vector<2x256xf32>
    %c7_136 = arith.constant 7 : index
    %c0_137 = arith.constant 0 : index
    %549 = vector.load %arg1[%c7_136, %c0_137] : memref<9x256xf32, #tpu.memory_space<vmem>>, vector<1x256xf32>
    %550 = vector.broadcast %549 : vector<1x256xf32> to vector<2x256xf32>
    %551 = arith.mulf %548, %550 : vector<2x256xf32>
    %552 = vector.broadcast %547 : f32 to vector<2x256xf32>
    %553 = arith.mulf %551, %552 : vector<2x256xf32>
    %554 = arith.addf %546, %553 : vector<2x256xf32>
    %c8_138 = arith.constant 8 : index
    %555 = memref.load %arg6[%c8_138] : memref<18xf32, #tpu.memory_space<smem>>
    %c239_i32_139 = arith.constant 239 : i32
    %556 = tpu.dynamic_rotate %460 by %c239_i32_139 dim 1 : vector<2x256xf32>, i32 -> vector<2x256xf32>
    %c8_140 = arith.constant 8 : index
    %c0_141 = arith.constant 0 : index
    %557 = vector.load %arg1[%c8_140, %c0_141] : memref<9x256xf32, #tpu.memory_space<vmem>>, vector<1x256xf32>
    %558 = vector.broadcast %557 : vector<1x256xf32> to vector<2x256xf32>
    %559 = arith.mulf %556, %558 : vector<2x256xf32>
    %560 = vector.broadcast %555 : f32 to vector<2x256xf32>
    %561 = arith.mulf %559, %560 : vector<2x256xf32>
    %562 = arith.addf %554, %561 : vector<2x256xf32>
    %c9_142 = arith.constant 9 : index
    %563 = memref.load %arg6[%c9_142] : memref<18xf32, #tpu.memory_space<smem>>
    %c17_i32_143 = arith.constant 17 : i32
    %564 = tpu.dynamic_rotate %492 by %c17_i32_143 dim 1 : vector<2x256xf32>, i32 -> vector<2x256xf32>
    %c0_144 = arith.constant 0 : index
    %c0_145 = arith.constant 0 : index
    %565 = vector.load %arg1[%c0_144, %c0_145] : memref<9x256xf32, #tpu.memory_space<vmem>>, vector<1x256xf32>
    %566 = vector.broadcast %565 : vector<1x256xf32> to vector<2x256xf32>
    %567 = arith.mulf %564, %566 : vector<2x256xf32>
    %568 = vector.broadcast %563 : f32 to vector<2x256xf32>
    %569 = arith.mulf %567, %568 : vector<2x256xf32>
    %570 = arith.addf %562, %569 : vector<2x256xf32>
    %c10_146 = arith.constant 10 : index
    %571 = memref.load %arg6[%c10_146] : memref<18xf32, #tpu.memory_space<smem>>
    %c16_i32_147 = arith.constant 16 : i32
    %572 = tpu.dynamic_rotate %492 by %c16_i32_147 dim 1 : vector<2x256xf32>, i32 -> vector<2x256xf32>
    %c1_148 = arith.constant 1 : index
    %c0_149 = arith.constant 0 : index
    %573 = vector.load %arg1[%c1_148, %c0_149] : memref<9x256xf32, #tpu.memory_space<vmem>>, vector<1x256xf32>
    %574 = vector.broadcast %573 : vector<1x256xf32> to vector<2x256xf32>
    %575 = arith.mulf %572, %574 : vector<2x256xf32>
    %576 = vector.broadcast %571 : f32 to vector<2x256xf32>
    %577 = arith.mulf %575, %576 : vector<2x256xf32>
    %578 = arith.addf %570, %577 : vector<2x256xf32>
    %c11_150 = arith.constant 11 : index
    %579 = memref.load %arg6[%c11_150] : memref<18xf32, #tpu.memory_space<smem>>
    %c15_i32_151 = arith.constant 15 : i32
    %580 = tpu.dynamic_rotate %492 by %c15_i32_151 dim 1 : vector<2x256xf32>, i32 -> vector<2x256xf32>
    %c2_152 = arith.constant 2 : index
    %c0_153 = arith.constant 0 : index
    %581 = vector.load %arg1[%c2_152, %c0_153] : memref<9x256xf32, #tpu.memory_space<vmem>>, vector<1x256xf32>
    %582 = vector.broadcast %581 : vector<1x256xf32> to vector<2x256xf32>
    %583 = arith.mulf %580, %582 : vector<2x256xf32>
    %584 = vector.broadcast %579 : f32 to vector<2x256xf32>
    %585 = arith.mulf %583, %584 : vector<2x256xf32>
    %586 = arith.addf %578, %585 : vector<2x256xf32>
    %c12_154 = arith.constant 12 : index
    %587 = memref.load %arg6[%c12_154] : memref<18xf32, #tpu.memory_space<smem>>
    %c1_i32_155 = arith.constant 1 : i32
    %588 = tpu.dynamic_rotate %492 by %c1_i32_155 dim 1 : vector<2x256xf32>, i32 -> vector<2x256xf32>
    %c3_156 = arith.constant 3 : index
    %c0_157 = arith.constant 0 : index
    %589 = vector.load %arg1[%c3_156, %c0_157] : memref<9x256xf32, #tpu.memory_space<vmem>>, vector<1x256xf32>
    %590 = vector.broadcast %589 : vector<1x256xf32> to vector<2x256xf32>
    %591 = arith.mulf %588, %590 : vector<2x256xf32>
    %592 = vector.broadcast %587 : f32 to vector<2x256xf32>
    %593 = arith.mulf %591, %592 : vector<2x256xf32>
    %594 = arith.addf %586, %593 : vector<2x256xf32>
    %c13_158 = arith.constant 13 : index
    %595 = memref.load %arg6[%c13_158] : memref<18xf32, #tpu.memory_space<smem>>
    %596 = vector.broadcast %595 : f32 to vector<2x256xf32>
    %597 = arith.mulf %492, %596 : vector<2x256xf32>
    %598 = arith.addf %594, %597 : vector<2x256xf32>
    %c14_159 = arith.constant 14 : index
    %599 = memref.load %arg6[%c14_159] : memref<18xf32, #tpu.memory_space<smem>>
    %c255_i32_160 = arith.constant 255 : i32
    %600 = tpu.dynamic_rotate %492 by %c255_i32_160 dim 1 : vector<2x256xf32>, i32 -> vector<2x256xf32>
    %c5_161 = arith.constant 5 : index
    %c0_162 = arith.constant 0 : index
    %601 = vector.load %arg1[%c5_161, %c0_162] : memref<9x256xf32, #tpu.memory_space<vmem>>, vector<1x256xf32>
    %602 = vector.broadcast %601 : vector<1x256xf32> to vector<2x256xf32>
    %603 = arith.mulf %600, %602 : vector<2x256xf32>
    %604 = vector.broadcast %599 : f32 to vector<2x256xf32>
    %605 = arith.mulf %603, %604 : vector<2x256xf32>
    %606 = arith.addf %598, %605 : vector<2x256xf32>
    %c15_163 = arith.constant 15 : index
    %607 = memref.load %arg6[%c15_163] : memref<18xf32, #tpu.memory_space<smem>>
    %c241_i32_164 = arith.constant 241 : i32
    %608 = tpu.dynamic_rotate %492 by %c241_i32_164 dim 1 : vector<2x256xf32>, i32 -> vector<2x256xf32>
    %c6_165 = arith.constant 6 : index
    %c0_166 = arith.constant 0 : index
    %609 = vector.load %arg1[%c6_165, %c0_166] : memref<9x256xf32, #tpu.memory_space<vmem>>, vector<1x256xf32>
    %610 = vector.broadcast %609 : vector<1x256xf32> to vector<2x256xf32>
    %611 = arith.mulf %608, %610 : vector<2x256xf32>
    %612 = vector.broadcast %607 : f32 to vector<2x256xf32>
    %613 = arith.mulf %611, %612 : vector<2x256xf32>
    %614 = arith.addf %606, %613 : vector<2x256xf32>
    %c16_167 = arith.constant 16 : index
    %615 = memref.load %arg6[%c16_167] : memref<18xf32, #tpu.memory_space<smem>>
    %c240_i32_168 = arith.constant 240 : i32
    %616 = tpu.dynamic_rotate %492 by %c240_i32_168 dim 1 : vector<2x256xf32>, i32 -> vector<2x256xf32>
    %c7_169 = arith.constant 7 : index
    %c0_170 = arith.constant 0 : index
    %617 = vector.load %arg1[%c7_169, %c0_170] : memref<9x256xf32, #tpu.memory_space<vmem>>, vector<1x256xf32>
    %618 = vector.broadcast %617 : vector<1x256xf32> to vector<2x256xf32>
    %619 = arith.mulf %616, %618 : vector<2x256xf32>
    %620 = vector.broadcast %615 : f32 to vector<2x256xf32>
    %621 = arith.mulf %619, %620 : vector<2x256xf32>
    %622 = arith.addf %614, %621 : vector<2x256xf32>
    %c17_171 = arith.constant 17 : index
    %623 = memref.load %arg6[%c17_171] : memref<18xf32, #tpu.memory_space<smem>>
    %c239_i32_172 = arith.constant 239 : i32
    %624 = tpu.dynamic_rotate %492 by %c239_i32_172 dim 1 : vector<2x256xf32>, i32 -> vector<2x256xf32>
    %c8_173 = arith.constant 8 : index
    %c0_174 = arith.constant 0 : index
    %625 = vector.load %arg1[%c8_173, %c0_174] : memref<9x256xf32, #tpu.memory_space<vmem>>, vector<1x256xf32>
    %626 = vector.broadcast %625 : vector<1x256xf32> to vector<2x256xf32>
    %627 = arith.mulf %624, %626 : vector<2x256xf32>
    %628 = vector.broadcast %623 : f32 to vector<2x256xf32>
    %629 = arith.mulf %627, %628 : vector<2x256xf32>
    %630 = arith.addf %622, %629 : vector<2x256xf32>
    %631 = vector.shape_cast %630 : vector<2x256xf32> to vector<1x2x256xf32>
    %cst_175 = arith.constant dense<0.000000e+00> : vector<1xf32>
    %632 = vector.multi_reduction <add>, %631, %cst_175 [1, 2] : vector<1x2x256xf32> to vector<1xf32>
    %633 = vector.shape_cast %632 : vector<1xf32> to vector<1x1x1xf32>
    %634 = vector.extract %633[0, 0, 0] : f32 from vector<1x1x1xf32>
    %635 = vector.broadcast %634 : f32 to vector<1x1xf32>
    %cst_176 = arith.constant 0.001953125 : f32
    %636 = vector.broadcast %cst_176 : f32 to vector<1x1xf32>
    %637 = arith.mulf %635, %636 : vector<1x1xf32>
    %638 = arith.mulf %630, %630 : vector<2x256xf32>
    %639 = vector.shape_cast %638 : vector<2x256xf32> to vector<1x2x256xf32>
    %cst_177 = arith.constant dense<0.000000e+00> : vector<1xf32>
    %640 = vector.multi_reduction <add>, %639, %cst_177 [1, 2] : vector<1x2x256xf32> to vector<1xf32>
    %641 = vector.shape_cast %640 : vector<1xf32> to vector<1x1x1xf32>
    %642 = vector.extract %641[0, 0, 0] : f32 from vector<1x1x1xf32>
    %643 = vector.broadcast %642 : f32 to vector<1x1xf32>
    %cst_178 = arith.constant 0.001953125 : f32
    %644 = vector.broadcast %cst_178 : f32 to vector<1x1xf32>
    %645 = arith.mulf %643, %644 : vector<1x1xf32>
    %646 = arith.mulf %637, %637 : vector<1x1xf32>
    %647 = arith.subf %645, %646 : vector<1x1xf32>
    %648 = vector.broadcast %637 : vector<1x1xf32> to vector<2x256xf32>
    %649 = arith.subf %630, %648 : vector<2x256xf32>
    %c0_179 = arith.constant 0 : index
    %650 = memref.load %arg8[%c0_179] : memref<1xf32, #tpu.memory_space<smem>>
    %cst_180 = arith.constant 9.99999974E-6 : f32
    %651 = vector.broadcast %cst_180 : f32 to vector<1x1xf32>
    %652 = arith.addf %647, %651 : vector<1x1xf32>
    %653 = math.rsqrt %652 : vector<1x1xf32>
    %654 = vector.broadcast %650 : f32 to vector<1x1xf32>
    %655 = arith.mulf %654, %653 : vector<1x1xf32>
    %656 = vector.broadcast %655 : vector<1x1xf32> to vector<2x256xf32>
    %657 = arith.mulf %649, %656 : vector<2x256xf32>
    %c0_181 = arith.constant 0 : index
    %658 = memref.load %arg9[%c0_181] : memref<1xf32, #tpu.memory_space<smem>>
    %659 = vector.broadcast %658 : f32 to vector<2x256xf32>
    %660 = arith.addf %657, %659 : vector<2x256xf32>
    %cst_182 = arith.constant 0.000000e+00 : f32
    %661 = vector.broadcast %cst_182 : f32 to vector<2x256xf32>
    %662 = arith.maximumf %660, %661 : vector<2x256xf32>
    %cst_183 = arith.constant dense<0xFF800000> : vector<2xf32>
    %663 = vector.multi_reduction <maximumf>, %662, %cst_183 [1] : vector<2x256xf32> to vector<2xf32>
    %664 = vector.shape_cast %663 : vector<2xf32> to vector<2x1xf32>
    %665 = vector.broadcast %664 : vector<2x1xf32> to vector<2x256xf32>
    %666 = arith.subf %662, %665 : vector<2x256xf32>
    %667 = math.exp %666 : vector<2x256xf32>
    %cst_184 = arith.constant dense<0.000000e+00> : vector<2xf32>
    %668 = vector.multi_reduction <add>, %667, %cst_184 [1] : vector<2x256xf32> to vector<2xf32>
    %669 = vector.shape_cast %668 : vector<2xf32> to vector<2x1xf32>
    %670 = vector.broadcast %669 : vector<2x1xf32> to vector<2x256xf32>
    %671 = arith.divf %667, %670 : vector<2x256xf32>
    %c0_185 = arith.constant 0 : index
    %c0_186 = arith.constant 0 : index
    %672 = vector.load %arg10[%c0_185, %c0_186] : memref<2x256xf32, #tpu.memory_space<vmem>>, vector<2x256xf32>
    tpu.vector_store %arg10[%c0_185, %c0_186], %671 {strides = array<i32>} : memref<2x256xf32, #tpu.memory_space<vmem>>, vector<2x256xf32>,
    return
  }
}

</mosaic_0001>

<bundles_post_ra>
// kernel: policy_head.1
= control target key start
LH: loop header
LB: loop body
LE: loop exit
PB: predicated region body
PF: predicated region fallthrough
CT: control target
= control target key end

     0   :  { %s3251_s0 = inlined_call_operand.vmem [shape: f32[2,4,256], index: 0, kind: input, shape index: {}]   ;;  %s3252_s1 = inlined_call_operand.vmem [shape: f32[9,256], index: 1, kind: input, shape index: {}]   ;;  %s3253_s2 = inlined_call_operand.vmem [shape: f32[72], index: 2, kind: input, shape index: {}]   ;;  %s3254_s3 = inlined_call_operand.vmem [shape: f32[2], index: 3, kind: input, shape index: {}]   ;;  %s3255_s4 = inlined_call_operand.vmem [shape: f32[2], index: 4, kind: input, shape index: {}]   ;;  %s3256_s5 = inlined_call_operand.vmem [shape: f32[2], index: 5, kind: input, shape index: {}]   ;;  %s3257_s6 = inlined_call_operand.vmem [shape: f32[18], index: 6, kind: input, shape index: {}]   ;;  %s3258_s7 = inlined_call_operand.<no memory space> [shape: f32[1], index: 7, kind: input, shape index: {}]   ;;  %s3259_s8 = inlined_call_operand.<no memory space> [shape: f32[1], index: 8, kind: input, shape index: {}]   ;;  %s3260_s9 = inlined_call_operand.<no memory space> [shape: f32[1], index: 9, kind: input, shape index: {}]   ;;  %s3261_s10 = inlined_call_operand.hbm [shape: f32[2,256], index: 10, kind: output, shape index: {}]  }
   0x1   :  { %3281 = sst [smem:[#allocation19_spill]] %s3258_s7 }
   0x2   :  { %3282 = sst [smem:[#allocation20_spill]] %s3259_s8 }
   0x3   :  { %3283 = sst [smem:[#allocation21_spill]] %s3260_s9 }
   0x4   :  { %3284 = sst [smem:[#allocation22_spill]] %s3261_s10 }
   0x5   :  { %18 = vsyncpa [#allocation7], 0 }
   0x6   :  { %19 = vsyncpa [#allocation9], 0 }
   0x7   :  { %20 = vsyncpa [#allocation12], 0  ;;  %s42_s15 = sshll.u32 %s3254_s3, 4  ;;  %s43_s15 = int_to_ptr.vmem [resolvable:$true] %s42_s15 }
   0x8   :  { %21 = vsyncpa [#allocation6], 0  ;;  %s62_s18 = sshll.u32 %s3256_s5, 4  ;;  %s1731_s19 = scalar_lea.vmem %s43_s15, 16  ;;  %s63_s18 = int_to_ptr.vmem [resolvable:$true] %s62_s18 }
   0x9   :  { %p1732_p0 = scmp.ne.s32.totalorder %s43_s15, %s1731_s19  ;;  %p1736_p1 = scmp.lt.s32.totalorder %s43_s15, %s43_s15 }
   0xa   :  { %p1737_p2 = scmp.lt.s32.totalorder %s1731_s19, %s1731_s19 }
   0xc   :  { %p1738_p3 = por %p1737_p2, %p1736_p1 }
   0xe   :  { %p1739_p4 = pnand %p1738_p3, %p1732_p0 }
  0x10   :  { %1742 = shalt.err (!%p1739_p4)
}
  0x11   :  { %s1821_s20 = smov [#allocation8]   ;;  %s1743_s21 = scalar_lea.vmem %s63_s18, 16 }
  0x12   :  { %45 = dma.vmem_to_smem %s43_s15, 16, %s1821_s20, [#allocation9]  }
  0x13   :  { %p1744_p5 = scmp.ne.s32.totalorder %s63_s18, %s1743_s21  ;;  %p1748_p6 = scmp.lt.s32.totalorder %s63_s18, %s63_s18 }
  0x14   :  { %p1749_p7 = scmp.lt.s32.totalorder %s1743_s21, %s1743_s21 }
  0x16   :  { %p1750_p8 = por %p1749_p7, %p1748_p6 }
  0x18   :  { %p1751_p9 = pnand %p1750_p8, %p1744_p5 }
  0x1a   :  { %1754 = shalt.err (!%p1751_p9)
}
  0x1b   :  { %s1822_s3 = smov [#allocation11]   ;;  %s32_s23 = sshll.u32 %s3253_s2, 4  ;;  %s33_s23 = int_to_ptr.vmem [resolvable:$true] %s32_s23 }
  0x1c   :  { %65 = dma.vmem_to_smem %s63_s18, 16, %s1822_s3, [#allocation12]  }
  0x1d   :  { %s52_s26 = sshll.u32 %s3255_s4, 4  ;;  %s1755_s27 = scalar_lea.vmem %s33_s23, 16  ;;  %s53_s26 = int_to_ptr.vmem [resolvable:$true] %s52_s26 }
  0x1e   :  { %p1756_p10 = scmp.ne.s32.totalorder %s33_s23, %s1755_s27  ;;  %p1760_p11 = scmp.lt.s32.totalorder %s33_s23, %s33_s23 }
  0x1f   :  { %p1761_p12 = scmp.lt.s32.totalorder %s1755_s27, %s1755_s27 }
  0x21   :  { %p1762_p13 = por %p1761_p12, %p1760_p11 }
  0x23   :  { %p1763_p0 = pnand %p1762_p13, %p1756_p10 }
  0x25   :  { %1766 = shalt.err (!%p1763_p0)
}
  0x26   :  { %s1823_s28 = smov [#allocation5]   ;;  %s1767_s29 = scalar_lea.vmem %s53_s26, 16 }
  0x27   :  { %35 = dma.vmem_to_smem %s33_s23, 16, %s1823_s28, [#allocation7]  }
  0x28   :  { %p1768_p1 = scmp.ne.s32.totalorder %s53_s26, %s1767_s29  ;;  %p1772_p2 = scmp.lt.s32.totalorder %s53_s26, %s53_s26 }
  0x29   :  { %p1773_p3 = scmp.lt.s32.totalorder %s1767_s29, %s1767_s29 }
  0x2b   :  { %p1774_p4 = por %p1773_p3, %p1772_p2 }
  0x2d   :  { %p1775_p5 = pnand %p1774_p4, %p1768_p1 }
  0x2f   :  { %1778 = shalt.err (!%p1775_p5)
}
  0x30   :  { %s1824_s2 = smov [#allocation10]   ;;  %s72_s11 = sshll.u32 %s3257_s6, 4  ;;  %s73_s11 = int_to_ptr.vmem [resolvable:$true] %s72_s11 }
  0x31   :  { %55 = dma.vmem_to_smem %s53_s26, 16, %s1824_s2, [#allocation9]  }
  0x32   :  { %s1779_s12 = scalar_lea.vmem %s73_s11, 16  ;;  %p1784_p7 = scmp.lt.s32.totalorder %s73_s11, %s73_s11 }
  0x33   :  { %p1780_p6 = scmp.ne.s32.totalorder %s73_s11, %s1779_s12  ;;  %p1785_p8 = scmp.lt.s32.totalorder %s1779_s12, %s1779_s12 }
  0x35   :  { %p1786_p9 = por %p1785_p8, %p1784_p7 }
  0x37   :  { %p1787_p10 = pnand %p1786_p9, %p1780_p6 }
  0x39   :  { %1790 = shalt.err (!%p1787_p10)
}
  0x3a   :  { %s1825_s13 = smov [#allocation13]  }
  0x3b   :  { %75 = dma.vmem_to_smem %s73_s11, 16, %s1825_s13, [#allocation12]  }
  0x3c   :  { %1813 = dma.done.wait [#allocation7], 16  }
  0x3d   :  { %1814 = vsyncadd [#allocation7], 4294967280 }
  0x3e   :  { %1815 = dma.done.wait [#allocation9], 32  }
  0x3f   :  { %1816 = vsyncadd [#allocation9], 4294967264 }
  0x40   :  { %1817 = dma.done.wait [#allocation12], 32  }
  0x41   :  { %1818 = vsyncadd [#allocation12], 4294967264 }
  0x42   :  { %97 = sfence }
  0x43   :  { %v106_v0 = vlaneseq  ;;  %v1911_v2 = vld [vmem:[%s3251_s0] sm:$0xff]  ;;  %v1916_v3 = vld [vmem:[%s3251_s0 + $0x8] sm:$0xff]  ;;  %vm122_vm0 = vcmask 1041409   ;;  %s3262_s17 = smov 16   ;;  %s3270_s18 = smov 17   ;;  %vm1164_vm9 = vcmask 1041408  }
  0x44   :  { %s3264_s19 = smov 15   ;;  %s3268_s20 = smov 1   ;;  %v1594_v37 = vld [vmem:[%s3252_s1 + $0x1] ss:$8 sm:$0x3] }
  0x45   :  { %v1906_v1 = vshrl.u32 %v106_v0, 7  ;;  %s3266_s21 = smov 127   ;;  %s3276_s3 = smov 113   ;;  %v2063_v36 = vand.u32 127, %v106_v0 }
  0x46   :  { %s3274_s5 = smov 112   ;;  %s3272_s22 = smov 111   ;;  %v136_v38 = vld [vmem:[%s3252_s1] ss:$8 sm:$0x3] }
  0x47   :  { %v1919_v4 = vsub.s32 0, %v1906_v1  ;;  %v1922_v5 = vsub.s32 4, %v1906_v1  ;;  %v1947_v12 = vsub.s32 5, %v1906_v1  ;;  %v1950_v13 = vsub.s32 1, %v1906_v1  ;;  %s2038_s23 = sld [smem:[#allocation5 + $0x4]]  ;;  %s2040_s24 = sld [smem:[#allocation5 + $0x1]] }
  0x48   :  { %v1979_v20 = vsub.s32 6, %v1906_v1  ;;  %v1982_v21 = vsub.s32 2, %v1906_v1  ;;  %v2011_v28 = vsub.s32 7, %v1906_v1  ;;  %v2014_v29 = vsub.s32 3, %v1906_v1  ;;  %s2042_s25 = sld [smem:[#allocation5 + $0x28]]  ;;  %s2048_s26 = sld [smem:[#allocation5 + $0x25]] }
  0x49   :  { %v109_v6 = vrot.slane %v1911_v2, %v1919_v4  ;;  %v117_v7 = vrot.slane %v1916_v3, %v1919_v4  ;;  %v113_v8 = vrot.slane %v1911_v2, %v1922_v5  ;;  %v121_v9 = vrot.slane %v1916_v3, %v1922_v5  ;;  %s2050_s27 = sld [smem:[#allocation8]]  ;;  %s2052_s28 = sld [smem:[#allocation8 + $0x1]]  ;;  %v1597_v39 = vld [vmem:[%s3252_s1 + $0x2] ss:$8 sm:$0x3] }
  0x4a   :  { %v463_v14 = vrot.slane %v1911_v2, %v1947_v12  ;;  %v471_v15 = vrot.slane %v1916_v3, %v1947_v12  ;;  %v459_v16 = vrot.slane %v1911_v2, %v1950_v13  ;;  %v467_v17 = vrot.slane %v1916_v3, %v1950_v13  ;;  %s2054_s29 = sld [smem:[#allocation5]]  ;;  %s2056_s2 = sld [smem:[#allocation5 + $0x24]]  ;;  %v1600_v42 = vld [vmem:[%s3252_s1 + $0x3] ss:$8 sm:$0x3] }
  0x4b   :  { %v123_v10 = vsel %vm122_vm0, %v117_v7, %v109_v6  ;;  %v124_v11 = vsel %vm122_vm0, %v121_v9, %v113_v8  ;;  %v699_v22 = vrot.slane %v1911_v2, %v1979_v20  ;;  %v707_v23 = vrot.slane %v1916_v3, %v1979_v20  ;;  %s2065_s4 = sld [smem:[#allocation5 + $0x2]]  ;;  %s2067_s30 = sld [smem:[#allocation5 + $0x26]]  ;;  %v1605_v59 = vld [vmem:[%s3252_s1 + $0x5] ss:$8 sm:$0x3] }
  0x4c   :  { %162 = vrot.lane.b32.xlu1 %v123_v10, %s3262_s17  ;;  %127 = vrot.lane.b32.xlu0 %v123_v10, %s3270_s18  ;;  %v473_v18 = vsel %vm122_vm0, %v471_v15, %v463_v14  ;;  %v472_v19 = vsel %vm122_vm0, %v467_v17, %v459_v16  ;;  %v695_v24 = vrot.slane %v1911_v2, %v1982_v21  ;;  %s2085_s11 = sld [smem:[#allocation5 + $0x27]]  ;;  %vm166_vm1 = vcmp.lt.s32.totalorder %v2063_v36, 16  ;;  %s2111_s12 = sld [smem:[#allocation5 + $0x2a]]  ;;  %v1608_v60 = vld [vmem:[%s3252_s1 + $0x6] ss:$8 sm:$0x3] }
  0x4d   :  { %v703_v25 = vrot.slane %v1916_v3, %v1982_v21  ;;  %v709_v26 = vsel %vm122_vm0, %v707_v23, %v699_v22  ;;  %v935_v30 = vrot.slane %v1911_v2, %v2011_v28  ;;  %v943_v31 = vrot.slane %v1916_v3, %v2011_v28  ;;  %s2147_s16 = sld [smem:[#allocation5 + $0x7]]  ;;  %s2149_s13 = sld [smem:[#allocation5 + $0x2b]]  ;;  %v1611_v23 = vld [vmem:[%s3252_s1 + $0x7] ss:$8 sm:$0x3] }
  0x4e   :  { %v931_v32 = vrot.slane %v1911_v2, %v2014_v29  ;;  %v939_v33 = vrot.slane %v1916_v3, %v2014_v29  ;;  %v265_v40 = vstv %s2038_s23  ;;  %v185_v41 = vstv %s2040_s24  ;;  %s2103_s23 = sld [smem:[#allocation5 + $0x29]]  ;;  %s2156_s6 = sld [smem:[#allocation5 + $0x8]] }
  0x4f   :  { %v708_v27 = vsel %vm122_vm0, %v703_v25, %v695_v24  ;;  %v2029_v34 = vsel %vm122_vm0, %v943_v31, %v935_v30  ;;  %v293_v43 = vstv %s2042_s25  ;;  %v2094_v44 = vrot.slane %v1594_v37, %v1919_v4  ;;  %s2109_s25 = sld [smem:[#allocation5 + $0x6]]  ;;  %s2158_s14 = sld [smem:[#allocation5 + $0x2c]] }
  0x50   :  { %164 = vrot.lane.b32.xlu1 %v124_v11, %s3262_s17  ;;  %129 = vrot.lane.b32.xlu0 %v124_v11, %s3270_s18  ;;  %v2032_v35 = vsel %vm122_vm0, %v939_v33, %v931_v32  ;;  %v2097_v45 = vrot.slane %v1594_v37, %v1950_v13  ;;  %v191_v46 = vstv %s2048_s26  ;;  %v101_v47 = vstv %s2050_s27  ;;  %s2164_s15 = sld [smem:[#allocation5 + $0x9]]  ;;  %s2231_s9 = sld [smem:[#allocation5 + $0xd]] }
  0x51   :  { %v103_v48 = vstv %s2052_s28  ;;  %vm133_vm2 = vcmp.lt.s32.totalorder %v2063_v36, 17  ;;  %v266_v49 = vmul.f32 %v265_v40, %v1911_v2  ;;  %v267_v50 = vmul.f32 %v265_v40, %v1916_v3  ;;  %s2233_s8 = sld [smem:[#allocation5 + $0x31]]  ;;  %s2241_s10 = sld [smem:[#allocation5 + $0xc]] }
  0x52   :  { %v2114_v51 = vrot.slane %v136_v38, %v1919_v4  ;;  %v2117_v52 = vrot.slane %v136_v38, %v1950_v13  ;;  %v294_v53 = vmul.f32 %v293_v43, %v1911_v2  ;;  %v295_v54 = vmul.f32 %v293_v43, %v1916_v3  ;;  %v1614_v43 = vld [vmem:[%s3252_s1 + $0x10] ss:$8 sm:$0x3]  ;;  %s3285_s1 = smov 112   ;;  %s3286_s7 = smov 111  }
  0x53   :  { %v151_v55 = vstv %s2054_s29  ;;  %v157_v56 = vstv %s2056_s2  ;;  %v2124_v57 = vrot.slane %v1597_v39, %v1919_v4  ;;  %v2127_v58 = vrot.slane %v1597_v39, %v1950_v13  ;;  %s2441_s24 = sld [smem:[#allocation5 + $0x3a]]  ;;  %s2457_s26 = sld [smem:[#allocation5 + $0x33]] }
  0x54   :  { %198 = vrot.lane.b32.xlu1 %v124_v11, %s3264_s19  ;;  %196 = vrot.lane.b32.xlu0 %v123_v10, %s3264_s19  ;;  %v219_v61 = vstv %s2065_s4  ;;  %v225_v62 = vstv %s2067_s30  ;;  %v2142_v63 = vrot.slane %v1600_v42, %v1919_v4  ;;  %v2145_v0 = vrot.slane %v1600_v42, %v1950_v13  ;;  %s2483_s27 = sld [smem:[#allocation5 + $0x11]]  ;;  %s2485_s28 = sld [smem:[#allocation5 + $0x35]] }
  0x55   :  { %vm200_vm3 = vcmp.lt.s32.totalorder %v2063_v36, 15  ;;  %v273_v1 = vrot.slane %v266_v49, %v1919_v4  ;;  %v277_v6 = vrot.slane %v266_v49, %v1922_v5  ;;  %v281_v7 = vrot.slane %v267_v50, %v1919_v4  ;;  %s2495_s29 = sld [smem:[#allocation5 + $0x12]]  ;;  %s2497_s2 = sld [smem:[#allocation5 + $0x36]] }
  0x56   :  { %v285_v8 = vrot.slane %v267_v50, %v1922_v5  ;;  %v305_v14 = vrot.slane %v294_v53, %v1922_v5  ;;  %v309_v15 = vrot.slane %v295_v54, %v1919_v4  ;;  %v313_v16 = vrot.slane %v295_v54, %v1922_v5  ;;  %s2503_s4 = sld [smem:[#allocation5 + $0x13]]  ;;  %s2505_s30 = sld [smem:[#allocation5 + $0x37]] }
  0x57   :  { %v2174_v22 = vrot.slane %v1605_v59, %v1950_v13  ;;  %v349_v24 = vstv %s2103_s23  ;;  %v2186_v25 = vrot.slane %v1608_v60, %v1919_v4  ;;  %v377_v31 = vstv %s2109_s25  ;;  %s2521_s23 = sld [smem:[#allocation5 + $0x15]]  ;;  %s2523_s25 = sld [smem:[#allocation5 + $0x39]] }
  0x58   :  { %232 = vrot.lane.b32.xlu1 %v124_v11, %s3268_s20  ;;  %230 = vrot.lane.b32.xlu0 %v123_v10, %s3268_s20  ;;  %v2199_v30 = vsel %vm122_vm0, %v285_v8, %v277_v6  ;;  %vm234_vm4 = vcmp.lt.s32.totalorder %v2063_v36, 1  ;;  %v2212_v39 = vsel %vm122_vm0, %v313_v16, %v305_v14  ;;  %v2215_v40 = vrot.slane %v1611_v23, %v1919_v4 }
  0x59   :  { %v2218_v42 = vrot.slane %v1611_v23, %v1950_v13  ;;  %vm324_vm5 = vcmp.lt.s32.totalorder %v2063_v36, 127  ;;  %v2252_v8 = vrot.slane %v1614_v43, %v1950_v13  ;;  %vm358_vm6 = vcmp.lt.s32.totalorder %v2063_v36, 113 }
  0x5a   :  { %v585_v23 = vstv %s2233_s8  ;;  %vm392_vm7 = vcmp.lt.s32.totalorder %v2063_v36, 112  ;;  %vm426_vm8 = vcmp.lt.s32.totalorder %v2063_v36, 111  ;;  %s2351_s8 = sld [smem:[#allocation5 + $0xe]] }
  0x5c   :  { %322 = vrot.lane.b32.xlu1 %v124_v11, %s3266_s21  ;;  %320 = vrot.lane.b32.xlu0 %v123_v10, %s3266_s21 }
  0x60   :  { %356 = vrot.lane.b32.xlu1 %v124_v11, %s3276_s3  ;;  %354 = vrot.lane.b32.xlu0 %v123_v10, %s3276_s3 }
  0x64   :  { %390 = vrot.lane.b32.xlu1 %v124_v11, %s3274_s5  ;;  %388 = vrot.lane.b32.xlu0 %v123_v10, %s3274_s5 }
  0x68   :  { %424 = vrot.lane.b32.xlu1 %v124_v11, %s3272_s22  ;;  %422 = vrot.lane.b32.xlu0 %v123_v10, %s3272_s22  ;;  %v301_v11 = vrot.slane %v294_v53, %v1919_v4 }
  0x6a   :  { %v2209_v38 = vsel %vm122_vm0, %v309_v15, %v301_v11 }
  0x6c   :  { %478 = vrot.lane.b32.xlu1 %v473_v18, %s3270_s18  ;;  %476 = vrot.lane.b32.xlu0 %v472_v19, %s3270_s18 }
  0x70   :  { %498 = vrot.lane.b32.xlu1 %v473_v18, %s3262_s17  ;;  %496 = vrot.lane.b32.xlu0 %v472_v19, %s3262_s17 }
  0x74   :  { %518 = vrot.lane.b32.xlu1 %v473_v18, %s3264_s19  ;;  %516 = vrot.lane.b32.xlu0 %v472_v19, %s3264_s19 }
  0x78   :  { %538 = vrot.lane.b32.xlu1 %v473_v18, %s3268_s20  ;;  %536 = vrot.lane.b32.xlu0 %v472_v19, %s3268_s20 }
  0x7c   :  { %614 = vrot.lane.b32.xlu1 %v473_v18, %s3266_s21  ;;  %612 = vrot.lane.b32.xlu0 %v472_v19, %s3266_s21 }
  0x80   :  { %634 = vrot.lane.b32.xlu1 %v473_v18, %s3276_s3  ;;  %632 = vrot.lane.b32.xlu0 %v472_v19, %s3276_s3 }
  0x84   :  { %654 = vrot.lane.b32.xlu1 %v473_v18, %s3274_s5  ;;  %652 = vrot.lane.b32.xlu0 %v472_v19, %s3274_s5 }
  0x88   :  { %674 = vrot.lane.b32.xlu1 %v473_v18, %s3272_s22  ;;  %672 = vrot.lane.b32.xlu0 %v472_v19, %s3272_s22  ;;  %v259_v18 = vstv %s2085_s11  ;;  %v2171_v19 = vrot.slane %v1605_v59, %v1919_v4  ;;  %s2515_s11 = sld [smem:[#allocation5 + $0x14]] }
  0x8c   :  { %714 = vrot.lane.b32.xlu1 %v709_v26, %s3270_s18  ;;  %712 = vrot.lane.b32.xlu0 %v708_v27, %s3270_s18 }
  0x90   :  { %734 = vrot.lane.b32.xlu1 %v709_v26, %s3262_s17  ;;  %732 = vrot.lane.b32.xlu0 %v708_v27, %s3262_s17 }
  0x94   :  { %754 = vrot.lane.b32.xlu1 %v709_v26, %s3264_s19  ;;  %752 = vrot.lane.b32.xlu0 %v708_v27, %s3264_s19 }
  0x98   :  { %774 = vrot.lane.b32.xlu1 %v709_v26, %s3268_s20  ;;  %772 = vrot.lane.b32.xlu0 %v708_v27, %s3268_s20 }
  0x9c   :  { %850 = vrot.lane.b32.xlu1 %v709_v26, %s3266_s21  ;;  %848 = vrot.lane.b32.xlu0 %v708_v27, %s3266_s21 }
  0xa0   :  { %870 = vrot.lane.b32.xlu1 %v709_v26, %s3276_s3  ;;  %868 = vrot.lane.b32.xlu0 %v708_v27, %s3276_s3 }
  0xa4   :  { %890 = vrot.lane.b32.xlu1 %v709_v26, %s3274_s5  ;;  %888 = vrot.lane.b32.xlu0 %v708_v27, %s3274_s5  ;;  %s2193_s5 = sld [smem:[#allocation5 + $0x2e]] }
  0xa8   :  { %910 = vrot.lane.b32.xlu1 %v709_v26, %s3272_s22  ;;  %908 = vrot.lane.b32.xlu0 %v708_v27, %s3272_s22  ;;  %v2189_v26 = vrot.slane %v1608_v60, %v1950_v13  ;;  %s2191_s22 = sld [smem:[#allocation5 + $0xa]]  ;;  %v2196_v27 = vsel %vm122_vm0, %v281_v7, %v273_v1  ;;  %v2249_v7 = vrot.slane %v1614_v43, %v1919_v4 }
  0xac   :  { %950 = vrot.lane.b32.xlu1 %v2029_v34, %s3270_s18  ;;  %948 = vrot.lane.b32.xlu0 %v2032_v35, %s3270_s18  ;;  %s2203_s18 = sld [smem:[#allocation5 + $0xb]] }
  0xb0   :  { %970 = vrot.lane.b32.xlu1 %v2029_v34, %s3262_s17  ;;  %968 = vrot.lane.b32.xlu0 %v2032_v35, %s3262_s17  ;;  %s2101_s17 = sld [smem:[#allocation5 + $0x5]] }
  0xb4   :  { %990 = vrot.lane.b32.xlu1 %v2029_v34, %s3264_s19  ;;  %988 = vrot.lane.b32.xlu0 %v2032_v35, %s3264_s19  ;;  %s2083_s19 = sld [smem:[#allocation5 + $0x3]] }
  0xb6   :  { %v343_v5 = vstv %s2101_s17  ;;  %s2517_s17 = sld [smem:[#allocation5 + $0x38]] }
  0xb8   :  { %1010 = vrot.lane.b32.xlu1 %v2029_v34, %s3268_s20  ;;  %1008 = vrot.lane.b32.xlu0 %v2032_v35, %s3268_s20  ;;  %s2205_s20 = sld [smem:[#allocation5 + $0x2f]] }
  0xba   :  { %v253_v17 = vstv %s2083_s19  ;;  %s2439_s19 = sld [smem:[#allocation5 + $0x16]] }
  0xbc   :  { %1086 = vrot.lane.b32.xlu1 %v2029_v34, %s3266_s21  ;;  %1084 = vrot.lane.b32.xlu0 %v2032_v35, %s3266_s21  ;;  %s2166_s21 = sld [smem:[#allocation5 + $0x2d]] }
  0xbe   :  { %v163_v9 = vpop.permute.xlu1 %162  ;;  %v128_v10 = vpop.permute.xlu0 %127 }
  0xc0   :  { %1106 = vrot.lane.b32.xlu1 %v2029_v34, %s3276_s3  ;;  %1104 = vrot.lane.b32.xlu0 %v2032_v35, %s3276_s3  ;;  %s2243_s3 = sld [smem:[#allocation5 + $0x30]] }
  0xc2   :  { %v165_v33 = vpop.permute.xlu1 %164  ;;  %v130_v37 = vpop.permute.xlu0 %129 }
  0xc3   :  { %v167_v49 = vsel %vm166_vm1, %v163_v9, %v165_v33  ;;  %v168_v50 = vsel %vm166_vm1, %v165_v33, %v163_v9  ;;  %v134_v53 = vsel %vm133_vm2, %v128_v10, %v130_v37  ;;  %v135_v54 = vsel %vm133_vm2, %v130_v37, %v128_v10 }
  0xc4   :  { %v148_v59 = vmul.f32 %v2114_v51, %v135_v54  ;;  %v149_v60 = vmul.f32 %v2117_v52, %v134_v53  ;;  %1126 = vrot.lane.b32.xlu1 %v2029_v34, %s3285_s1  ;;  %1124 = vrot.lane.b32.xlu0 %v2032_v35, %s3285_s1  ;;  %v182_v11 = vmul.f32 %v2094_v44, %v168_v50  ;;  %v557_v54 = vstv %s2231_s9  ;;  %s2353_s9 = sld [smem:[#allocation5 + $0x32]]  ;;  %s2597_s1 = sld [smem:[#allocation5 + $0x1f]] }
  0xc5   :  { %v183_v14 = vmul.f32 %v2097_v45, %v167_v49 }
  0xc6   :  { %v199_v15 = vpop.permute.xlu1 %198  ;;  %v197_v16 = vpop.permute.xlu0 %196  ;;  %v152_v33 = vmul.f32 %v151_v55, %v148_v59  ;;  %v153_v37 = vmul.f32 %v151_v55, %v149_v60  ;;  %v158_v43 = vmul.f32 %v157_v56, %v148_v59  ;;  %v159_v53 = vmul.f32 %v157_v56, %v149_v60 }
  0xc7   :  { %v201_v50 = vsel %vm200_vm3, %v197_v16, %v199_v15  ;;  %v202_v49 = vsel %vm200_vm3, %v199_v15, %v197_v16 }
  0xc8   :  { %1146 = vrot.lane.b32.xlu1 %v2029_v34, %s3286_s7  ;;  %v154_v55 = vadd.f32 %v152_v33, %v101_v47  ;;  %v155_v56 = vadd.f32 %v153_v37, %v101_v47  ;;  %1144 = vrot.lane.b32.xlu0 %v2032_v35, %s3286_s7  ;;  %v160_v60 = vadd.f32 %v158_v43, %v103_v48  ;;  %s2595_s7 = sld [smem:[#allocation5 + $0x1d]] }
  0xc9   :  { %v161_v15 = vadd.f32 %v159_v53, %v103_v48  ;;  %v216_v16 = vmul.f32 %v2124_v57, %v202_v49  ;;  %v217_v33 = vmul.f32 %v2127_v58, %v201_v50  ;;  %v186_v35 = vmul.f32 %v185_v41, %v182_v11 }
  0xca   :  { %v233_v4 = vpop.permute.xlu1 %232  ;;  %v231_v47 = vpop.permute.xlu0 %230  ;;  %v187_v37 = vmul.f32 %v185_v41, %v183_v14  ;;  %v192_v34 = vmul.f32 %v191_v46, %v182_v11  ;;  %v193_v48 = vmul.f32 %v191_v46, %v183_v14 }
  0xcb   :  { %v188_v49 = vadd.f32 %v186_v35, %v154_v55  ;;  %v235_v59 = vsel %vm234_vm4, %v231_v47, %v233_v4  ;;  %v236_v10 = vsel %vm234_vm4, %v233_v4, %v231_v47  ;;  %v220_v6 = vmul.f32 %v219_v61, %v216_v16 }
  0xcc   :  { %v189_v50 = vadd.f32 %v187_v37, %v155_v56  ;;  %v194_v9 = vadd.f32 %v192_v34, %v160_v60  ;;  %v195_v41 = vadd.f32 %v193_v48, %v161_v15  ;;  %v221_v11 = vmul.f32 %v219_v61, %v217_v33 }
  0xcd   :  { %v226_v14 = vmul.f32 %v225_v62, %v216_v16  ;;  %v227_v55 = vmul.f32 %v225_v62, %v217_v33  ;;  %v250_v4 = vmul.f32 %v2142_v63, %v236_v10  ;;  %v251_v56 = vmul.f32 %v2145_v0, %v235_v59 }
  0xce   :  { %v323_v1 = vpop.permute.xlu1 %322  ;;  %v321_v46 = vpop.permute.xlu0 %320  ;;  %v558_v60 = vmul.f32 %v557_v54, %v1911_v2  ;;  %v559_v15 = vmul.f32 %v557_v54, %v1916_v3  ;;  %v2330_v10 = vmul.f32 %v585_v23, %v1911_v2  ;;  %v2333_v59 = vmul.f32 %v585_v23, %v1916_v3 }
  0xcf   :  { %v325_v34 = vsel %vm324_vm5, %v321_v46, %v323_v1  ;;  %v326_v61 = vsel %vm324_vm5, %v323_v1, %v321_v46  ;;  %v254_v16 = vmul.f32 %v253_v17, %v250_v4  ;;  %v255_v62 = vmul.f32 %v253_v17, %v251_v56 }
  0xd0   :  { %v222_v33 = vadd.f32 %v220_v6, %v188_v49  ;;  %v223_v47 = vadd.f32 %v221_v11, %v189_v50  ;;  %v260_v1 = vmul.f32 %v259_v18, %v250_v4  ;;  %v261_v35 = vmul.f32 %v259_v18, %v251_v56 }
  0xd1   :  { %v228_v46 = vadd.f32 %v226_v14, %v194_v9  ;;  %v229_v54 = vadd.f32 %v227_v55, %v195_v41  ;;  %v340_v53 = vmul.f32 %v2171_v19, %v325_v34  ;;  %v341_v17 = vmul.f32 %v2174_v22, %v326_v61 }
  0xd2   :  { %v357_v37 = vpop.permute.xlu1 %356  ;;  %v355_v48 = vpop.permute.xlu0 %354  ;;  %v256_v43 = vadd.f32 %v254_v16, %v222_v33  ;;  %v257_v32 = vadd.f32 %v255_v62, %v223_v47  ;;  %v565_v49 = vrot.slane %v558_v60, %v1950_v13  ;;  %v569_v18 = vrot.slane %v558_v60, %v1947_v12 }
  0xd3   :  { %v359_v23 = vsel %vm358_vm6, %v355_v48, %v357_v37  ;;  %v360_v6 = vsel %vm358_vm6, %v357_v37, %v355_v48  ;;  %v573_v50 = vrot.slane %v559_v15, %v1950_v13  ;;  %v577_v9 = vrot.slane %v559_v15, %v1947_v12 }
  0xd4   :  { %v262_v41 = vadd.f32 %v260_v1, %v228_v46  ;;  %v263_v11 = vadd.f32 %v261_v35, %v229_v54  ;;  %v374_v14 = vmul.f32 %v2186_v25, %v359_v23  ;;  %v375_v55 = vmul.f32 %v2189_v26, %v360_v6 }
  0xd5   :  { %v593_v34 = vrot.slane %v2330_v10, %v1950_v13  ;;  %v597_v61 = vrot.slane %v2330_v10, %v1947_v12  ;;  %v601_v60 = vrot.slane %v2333_v59, %v1950_v13  ;;  %v605_v15 = vrot.slane %v2333_v59, %v1947_v12 }
  0xd6   :  { %v391_v4 = vpop.permute.xlu1 %390  ;;  %v389_v56 = vpop.permute.xlu0 %388  ;;  %v290_v16 = vadd.f32 %v2196_v27, %v256_v43  ;;  %v291_v62 = vadd.f32 %v2199_v30, %v257_v32  ;;  %v344_v33 = vmul.f32 %v343_v5, %v340_v53  ;;  %v345_v47 = vmul.f32 %v343_v5, %v341_v17 }
  0xd7   :  { %v350_v1 = vmul.f32 %v349_v24, %v340_v53  ;;  %v351_v35 = vmul.f32 %v349_v24, %v341_v17  ;;  %v393_v37 = vsel %vm392_vm7, %v389_v56, %v391_v4  ;;  %v394_v48 = vsel %vm392_vm7, %v391_v4, %v389_v56 }
  0xd8   :  { %v318_v27 = vadd.f32 %v2209_v38, %v262_v41  ;;  %v319_v30 = vadd.f32 %v2212_v39, %v263_v11  ;;  %v378_v32 = vmul.f32 %v377_v31, %v374_v14  ;;  %v379_v5 = vmul.f32 %v377_v31, %v375_v55 }
  0xd9   :  { %v408_v24 = vmul.f32 %v2215_v40, %v393_v37  ;;  %v409_v46 = vmul.f32 %v2218_v42, %v394_v48  ;;  %v346_v17 = vadd.f32 %v344_v33, %v290_v16  ;;  %v347_v39 = vadd.f32 %v345_v47, %v291_v62 }
  0xda   :  { %v425_v43 = vpop.permute.xlu1 %424  ;;  %v423_v53 = vpop.permute.xlu0 %422  ;;  %v2390_v31 = vsel %vm122_vm0, %v573_v50, %v565_v49  ;;  %v2393_v23 = vsel %vm122_vm0, %v577_v9, %v569_v18  ;;  %v3287_v6 = vstv %s2111_s12  ;;  %v352_v16 = vadd.f32 %v350_v1, %v318_v27  ;;  %s2527_s12 = sld [smem:[#allocation5 + $0x17]] }
  0xdb   :  { %v427_v54 = vsel %vm426_vm8, %v423_v53, %v425_v43  ;;  %v428_v38 = vsel %vm426_vm8, %v425_v43, %v423_v53  ;;  %v384_v41 = vmul.f32 %v3287_v6, %v374_v14  ;;  %v3288_v11 = vmov %v3287_v6 }
  0xdc   :  { %v385_v4 = vmul.f32 %v3288_v11, %v375_v55  ;;  %v442_v56 = vmul.f32 %v2249_v7, %v427_v54  ;;  %v443_v37 = vmul.f32 %v2252_v8, %v428_v38  ;;  %v353_v62 = vadd.f32 %v351_v35, %v319_v30 }
  0xdd   :  { %v380_v9 = vadd.f32 %v378_v32, %v346_v17  ;;  %v381_v47 = vadd.f32 %v379_v5, %v347_v39  ;;  %v3289_v48 = vstv %s2147_s16  ;;  %v3291_v53 = vstv %s2149_s13  ;;  %s2529_s16 = sld [smem:[#allocation5 + $0x3b]]  ;;  %s2535_s13 = sld [smem:[#allocation5 + $0x18]] }
  0xde   :  { %v479_v33 = vpop.permute.xlu1 %478  ;;  %v477_v49 = vpop.permute.xlu0 %476  ;;  %v412_v14 = vmul.f32 %v3289_v48, %v408_v24  ;;  %v3290_v43 = vmov %v3289_v48  ;;  %v418_v54 = vmul.f32 %v3291_v53, %v408_v24  ;;  %v3292_v6 = vmov %v3291_v53 }
  0xdf   :  { %v413_v55 = vmul.f32 %v3290_v43, %v409_v46  ;;  %v419_v38 = vmul.f32 %v3292_v6, %v409_v46  ;;  %v480_v1 = vsel %vm133_vm2, %v477_v49, %v479_v33  ;;  %v481_v35 = vsel %vm133_vm2, %v479_v33, %v477_v49 }
  0xe0   :  { %v386_v27 = vadd.f32 %v384_v41, %v352_v16  ;;  %v387_v30 = vadd.f32 %v385_v4, %v353_v62  ;;  %v3293_v11 = vstv %s2156_s6  ;;  %v3295_v39 = vstv %s2158_s14  ;;  %s2537_s6 = sld [smem:[#allocation5 + $0x3c]]  ;;  %s2549_s14 = sld [smem:[#allocation5 + $0x19]] }
  0xe1   :  { %v446_v32 = vmul.f32 %v3293_v11, %v442_v56  ;;  %v3294_v5 = vmov %v3293_v11  ;;  %v452_v24 = vmul.f32 %v3295_v39, %v442_v56  ;;  %v3296_v48 = vmov %v3295_v39 }
  0xe2   :  { %v447_v17 = vmul.f32 %v3294_v5, %v443_v37  ;;  %v453_v46 = vmul.f32 %v3296_v48, %v443_v37  ;;  %v482_v43 = vmul.f32 %v481_v35, %v2114_v51  ;;  %v483_v53 = vmul.f32 %v480_v1, %v2117_v52  ;;  %v499_v6 = vpop.permute.xlu1 %498  ;;  %v497_v33 = vpop.permute.xlu0 %496 }
  0xe3   :  { %v414_v41 = vadd.f32 %v412_v14, %v380_v9  ;;  %v415_v16 = vadd.f32 %v413_v55, %v381_v47  ;;  %v500_v4 = vsel %vm166_vm1, %v497_v33, %v499_v6  ;;  %v501_v62 = vsel %vm166_vm1, %v499_v6, %v497_v33 }
  0xe4   :  { %v420_v49 = vadd.f32 %v418_v54, %v386_v27  ;;  %v421_v11 = vadd.f32 %v419_v38, %v387_v30  ;;  %v3297_v56 = vstv %s2164_s15  ;;  %v3299_v1 = vstv %s2166_s21  ;;  %s2455_s21 = sld [smem:[#allocation5 + $0xf]]  ;;  %s2551_s15 = sld [smem:[#allocation5 + $0x3d]] }
  0xe5   :  { %v486_v37 = vmul.f32 %v3297_v56, %v482_v43  ;;  %v3298_v5 = vmov %v3297_v56  ;;  %v492_v39 = vmul.f32 %v3299_v1, %v482_v43  ;;  %v3300_v9 = vmov %v3299_v1 }
  0xe6   :  { %v487_v35 = vmul.f32 %v3298_v5, %v483_v53  ;;  %v493_v47 = vmul.f32 %v3300_v9, %v483_v53  ;;  %v502_v14 = vmul.f32 %v501_v62, %v2094_v44  ;;  %v503_v55 = vmul.f32 %v500_v4, %v2097_v45  ;;  %v519_v48 = vpop.permute.xlu1 %518  ;;  %v517_v6 = vpop.permute.xlu0 %516 }
  0xe7   :  { %v448_v54 = vadd.f32 %v446_v32, %v414_v41  ;;  %v449_v38 = vadd.f32 %v447_v17, %v415_v16  ;;  %v454_v27 = vadd.f32 %v452_v24, %v420_v49  ;;  %v455_v30 = vadd.f32 %v453_v46, %v421_v11 }
  0xe8   :  { %v3301_v33 = vstv %s2191_s22  ;;  %v3303_v1 = vstv %s2193_s5  ;;  %v520_v50 = vsel %vm200_vm3, %v517_v6, %v519_v48  ;;  %v521_v32 = vsel %vm200_vm3, %v519_v48, %v517_v6  ;;  %s2475_s5 = sld [smem:[#allocation5 + $0x10]]  ;;  %s2477_s22 = sld [smem:[#allocation5 + $0x34]] }
  0xe9   :  { %v506_v56 = vmul.f32 %v3301_v33, %v502_v14  ;;  %v3302_v5 = vmov %v3301_v33  ;;  %v512_v53 = vmul.f32 %v3303_v1, %v502_v14  ;;  %v3304_v9 = vmov %v3303_v1 }
  0xea   :  { %v507_v43 = vmul.f32 %v3302_v5, %v503_v55  ;;  %v513_v62 = vmul.f32 %v3304_v9, %v503_v55  ;;  %v488_v18 = vadd.f32 %v486_v37, %v448_v54  ;;  %v489_v4 = vadd.f32 %v487_v35, %v449_v38  ;;  %v539_v37 = vpop.permute.xlu1 %538 }
  0xeb   :  { %v494_v17 = vadd.f32 %v492_v39, %v454_v27  ;;  %v495_v24 = vadd.f32 %v493_v47, %v455_v30  ;;  %v606_v46 = vsel %vm122_vm0, %v601_v60, %v593_v34  ;;  %v607_v41 = vsel %vm122_vm0, %v605_v15, %v597_v61  ;;  %v537_v34 = vpop.permute.xlu0 %536 }
  0xec   :  { %v508_v16 = vadd.f32 %v506_v56, %v488_v18  ;;  %v509_v49 = vadd.f32 %v507_v43, %v489_v4  ;;  %v522_v11 = vmul.f32 %v521_v32, %v2124_v57  ;;  %v523_v13 = vmul.f32 %v520_v50, %v2127_v58 }
  0xed   :  { %v514_v12 = vadd.f32 %v512_v53, %v494_v17  ;;  %v515_v10 = vadd.f32 %v513_v62, %v495_v24  ;;  %v540_v59 = vsel %vm234_vm4, %v537_v34, %v539_v37  ;;  %v541_v61 = vsel %vm234_vm4, %v539_v37, %v537_v34 }
  0xee   :  { %v3305_v60 = vstv %s2203_s18  ;;  %v3307_v35 = vstv %s2205_s20  ;;  %v542_v55 = vmul.f32 %v541_v61, %v2142_v63  ;;  %v543_v54 = vmul.f32 %v540_v59, %v2145_v0  ;;  %v615_v56 = vpop.permute.xlu1 %614  ;;  %s2557_s18 = sld [smem:[#allocation5 + $0x1a]]  ;;  %s2559_s20 = sld [smem:[#allocation5 + $0x3e]] }
  0xef   :  { %v526_v15 = vmul.f32 %v3305_v60, %v522_v11  ;;  %v3306_v50 = vmov %v3305_v60  ;;  %v532_v39 = vmul.f32 %v3307_v35, %v522_v11  ;;  %v3308_v47 = vmov %v3307_v35  ;;  %v613_v5 = vpop.permute.xlu0 %612 }
  0xf0   :  { %v527_v18 = vmul.f32 %v3306_v50, %v523_v13  ;;  %v533_v14 = vmul.f32 %v3308_v47, %v523_v13  ;;  %v793_v38 = vstv %s2439_s19  ;;  %v821_v27 = vstv %s2441_s24  ;;  %s2583_s19 = sld [smem:[#allocation5 + $0x1c]]  ;;  %s2585_s24 = sld [smem:[#allocation5 + $0x40]] }
  0xf1   :  { %v528_v30 = vadd.f32 %v526_v15, %v508_v16  ;;  %v534_v6 = vadd.f32 %v532_v39, %v514_v12  ;;  %v3309_v43 = vstv %s2241_s10  ;;  %v3311_v62 = vstv %s2243_s3  ;;  %s2569_s10 = sld [smem:[#allocation5 + $0x1b]]  ;;  %s2571_s3 = sld [smem:[#allocation5 + $0x3f]] }
  0xf2   :  { %v529_v48 = vadd.f32 %v527_v18, %v509_v49  ;;  %v535_v33 = vadd.f32 %v533_v14, %v515_v10  ;;  %v546_v1 = vmul.f32 %v3309_v43, %v542_v55  ;;  %v3310_v53 = vmov %v3309_v43  ;;  %v635_v10 = vpop.permute.xlu1 %634 }
  0xf3   :  { %v547_v9 = vmul.f32 %v3310_v53, %v543_v54  ;;  %v552_v4 = vmul.f32 %v3311_v62, %v542_v55  ;;  %v3312_v32 = vmov %v3311_v62  ;;  %v641_v24 = vstv %s2455_s21  ;;  %v633_v59 = vpop.permute.xlu0 %632  ;;  %s2717_s21 = sld [smem:[#allocation5 + $0x1e]] }
  0xf4   :  { %v553_v17 = vmul.f32 %v3312_v32, %v543_v54  ;;  %v647_v16 = vstv %s2457_s26  ;;  %v794_v49 = vmul.f32 %v793_v38, %v1911_v2  ;;  %v795_v11 = vmul.f32 %v793_v38, %v1916_v3  ;;  %s2719_s26 = sld [smem:[#allocation5 + $0x42]] }
  0xf5   :  { %v548_v13 = vadd.f32 %v546_v1, %v528_v30  ;;  %v549_v37 = vadd.f32 %v547_v9, %v529_v48  ;;  %v554_v34 = vadd.f32 %v552_v4, %v534_v6  ;;  %v661_v61 = vstv %s2475_s5  ;;  %s3083_s5 = sld [smem:[#allocation13 + $0x3]] }
  0xf6   :  { %v555_v12 = vadd.f32 %v553_v17, %v535_v33  ;;  %v667_v60 = vstv %s2477_s22  ;;  %v822_v15 = vmul.f32 %v821_v27, %v1911_v2  ;;  %v823_v50 = vmul.f32 %v821_v27, %v1916_v3  ;;  %v655_v54 = vpop.permute.xlu1 %654 }
  0xf7   :  { %v2540_v18 = vadd.f32 %v2390_v31, %v548_v13  ;;  %v2543_v35 = vadd.f32 %v2393_v23, %v549_v37  ;;  %v2545_v39 = vadd.f32 %v606_v46, %v554_v34  ;;  %v681_v2 = vstv %s2483_s27  ;;  %v653_v38 = vpop.permute.xlu0 %652 }
  0xf8   :  { %v2547_v47 = vadd.f32 %v607_v41, %v555_v12  ;;  %v687_v3 = vstv %s2485_s28  ;;  %v721_v14 = vstv %s2495_s29  ;;  %v727_v55 = vstv %s2497_s2  ;;  %s2881_s29 = sld [smem:[#allocation5 + $0x21]]  ;;  %s2883_s2 = sld [smem:[#allocation5 + $0x45]] }
  0xf9   :  { %v801_v31 = vrot.slane %v794_v49, %v1982_v21  ;;  %v805_v23 = vrot.slane %v794_v49, %v1979_v20  ;;  %v809_v46 = vrot.slane %v795_v11, %v1982_v21  ;;  %v813_v41 = vrot.slane %v795_v11, %v1979_v20  ;;  %s3356_s28 = sld [smem:[#allocation19_spill]] }
  0xfa   :  { %v741_v27 = vstv %s2503_s4  ;;  %v747_v30 = vstv %s2505_s30  ;;  %v829_v48 = vrot.slane %v822_v15, %v1982_v21  ;;  %v833_v6 = vrot.slane %v822_v15, %v1979_v20  ;;  %v675_v37 = vpop.permute.xlu1 %674  ;;  %s2907_s4 = sld [smem:[#allocation5 + $0x46]]  ;;  %s2945_s30 = sld [smem:[#allocation5 + $0x23]] }
  0xfb   :  { %v616_v33 = vsel %vm324_vm5, %v613_v5, %v615_v56  ;;  %v617_v43 = vsel %vm324_vm5, %v615_v56, %v613_v5  ;;  %v837_v1 = vrot.slane %v823_v50, %v1982_v21  ;;  %v841_v53 = vrot.slane %v823_v50, %v1979_v20  ;;  %v673_v34 = vpop.permute.xlu0 %672 }
  0xfc   :  { %v761_v9 = vstv %s2515_s11  ;;  %v767_v62 = vstv %s2517_s17  ;;  %v781_v4 = vstv %s2521_s23  ;;  %v787_v32 = vstv %s2523_s25  ;;  %s2947_s11 = sld [smem:[#allocation5 + $0x47]]  ;;  %s1197_s25 = sld [smem:[#allocation10]] }
  0xfd   :  { %v2588_v17 = vsel %vm122_vm0, %v809_v46, %v801_v31  ;;  %v2591_v56 = vsel %vm122_vm0, %v813_v41, %v805_v23  ;;  %v618_v5 = vmul.f32 %v616_v33, %v2171_v19  ;;  %v619_v49 = vmul.f32 %v617_v43, %v2174_v22 }
  0xfe   :  { %v636_v11 = vsel %vm358_vm6, %v633_v59, %v635_v10  ;;  %v637_v13 = vsel %vm358_vm6, %v635_v10, %v633_v59  ;;  %v2606_v12 = vsel %vm122_vm0, %v837_v1, %v829_v48  ;;  %v2609_v15 = vsel %vm122_vm0, %v841_v53, %v833_v6  ;;  %v715_v33 = vpop.permute.xlu1 %714 }
  0xff   :  { %v638_v10 = vmul.f32 %v636_v11, %v2186_v25  ;;  %v639_v59 = vmul.f32 %v637_v13, %v2189_v26  ;;  %v656_v48 = vsel %vm392_vm7, %v653_v38, %v655_v54  ;;  %v657_v6 = vsel %vm392_vm7, %v655_v54, %v653_v38  ;;  %v713_v11 = vpop.permute.xlu0 %712 }
 0x100   :  { %v3313_v43 = vstv %s2351_s8  ;;  %v3315_v13 = vstv %s2353_s9  ;;  %v676_v21 = vsel %vm426_vm8, %v673_v34, %v675_v37  ;;  %v677_v54 = vsel %vm426_vm8, %v675_v37, %v673_v34  ;;  %s2703_s8 = sld [smem:[#allocation5 + $0x43]]  ;;  %s2709_s9 = sld [smem:[#allocation5 + $0x41]] }
 0x101   :  { %v622_v1 = vmul.f32 %v3313_v43, %v618_v5  ;;  %v3314_v53 = vmov %v3313_v43  ;;  %v628_v31 = vmul.f32 %v3315_v13, %v618_v5  ;;  %v3316_v50 = vmov %v3315_v13 }
 0x102   :  { %v623_v41 = vmul.f32 %v3314_v53, %v619_v49  ;;  %v629_v20 = vmul.f32 %v3316_v50, %v619_v49  ;;  %v658_v38 = vmul.f32 %v656_v48, %v2215_v40  ;;  %v659_v43 = vmul.f32 %v657_v6, %v2218_v42  ;;  %v735_v6 = vpop.permute.xlu1 %734 }
 0x103   :  { %v642_v5 = vmul.f32 %v641_v24, %v638_v10  ;;  %v643_v49 = vmul.f32 %v641_v24, %v639_v59  ;;  %v624_v23 = vadd.f32 %v622_v1, %v2540_v18  ;;  %v678_v34 = vmul.f32 %v676_v21, %v2249_v7  ;;  %v733_v46 = vpop.permute.xlu0 %732 }
 0x104   :  { %v625_v37 = vadd.f32 %v623_v41, %v2543_v35  ;;  %v679_v48 = vmul.f32 %v677_v54, %v2252_v8  ;;  %v630_v53 = vadd.f32 %v628_v31, %v2545_v39  ;;  %v631_v24 = vadd.f32 %v629_v20, %v2547_v47 }
 0x105   :  { %v648_v50 = vmul.f32 %v647_v16, %v638_v10  ;;  %v649_v18 = vmul.f32 %v647_v16, %v639_v59  ;;  %v662_v1 = vmul.f32 %v661_v61, %v658_v38  ;;  %v663_v35 = vmul.f32 %v661_v61, %v659_v43 }
 0x106   :  { %v716_v21 = vsel %vm133_vm2, %v713_v11, %v715_v33  ;;  %v717_v41 = vsel %vm133_vm2, %v715_v33, %v713_v11  ;;  %v644_v54 = vadd.f32 %v642_v5, %v624_v23  ;;  %v645_v13 = vadd.f32 %v643_v49, %v625_v37  ;;  %v755_v10 = vpop.permute.xlu1 %754 }
 0x107   :  { %v668_v39 = vmul.f32 %v667_v60, %v658_v38  ;;  %v669_v47 = vmul.f32 %v667_v60, %v659_v43  ;;  %v682_v16 = vmul.f32 %v681_v2, %v678_v34  ;;  %v683_v20 = vmul.f32 %v681_v2, %v679_v48  ;;  %v753_v33 = vpop.permute.xlu0 %752 }
 0x108   :  { %v736_v61 = vsel %vm166_vm1, %v733_v46, %v735_v6  ;;  %v737_v31 = vsel %vm166_vm1, %v735_v6, %v733_v46  ;;  %v650_v23 = vadd.f32 %v648_v50, %v630_v53  ;;  %v651_v59 = vadd.f32 %v649_v18, %v631_v24 }
 0x109   :  { %v718_v11 = vmul.f32 %v717_v41, %v2114_v51  ;;  %v719_v60 = vmul.f32 %v716_v21, %v2117_v52  ;;  %v664_v38 = vadd.f32 %v662_v1, %v644_v54  ;;  %v665_v43 = vadd.f32 %v663_v35, %v645_v13 }
 0x10a   :  { %v756_v2 = vsel %vm200_vm3, %v753_v33, %v755_v10  ;;  %v757_v5 = vsel %vm200_vm3, %v755_v10, %v753_v33  ;;  %v688_v46 = vmul.f32 %v687_v3, %v678_v34  ;;  %v689_v53 = vmul.f32 %v687_v3, %v679_v48  ;;  %v775_v18 = vpop.permute.xlu1 %774 }
 0x10b   :  { %v738_v49 = vmul.f32 %v737_v31, %v2094_v44  ;;  %v739_v50 = vmul.f32 %v736_v61, %v2097_v45  ;;  %v670_v37 = vadd.f32 %v668_v39, %v650_v23  ;;  %v671_v6 = vadd.f32 %v669_v47, %v651_v59  ;;  %v773_v1 = vpop.permute.xlu0 %772 }
 0x10c   :  { %v684_v13 = vadd.f32 %v682_v16, %v664_v38  ;;  %v685_v24 = vadd.f32 %v683_v20, %v665_v43  ;;  %v722_v35 = vmul.f32 %v721_v14, %v718_v11  ;;  %v723_v34 = vmul.f32 %v721_v14, %v719_v60 }
 0x10d   :  { %v758_v3 = vmul.f32 %v757_v5, %v2124_v57  ;;  %v759_v48 = vmul.f32 %v756_v2, %v2127_v58  ;;  %v728_v21 = vmul.f32 %v727_v55, %v718_v11  ;;  %v729_v41 = vmul.f32 %v727_v55, %v719_v60 }
 0x10e   :  { %v776_v54 = vsel %vm234_vm4, %v773_v1, %v775_v18  ;;  %v777_v39 = vsel %vm234_vm4, %v775_v18, %v773_v1  ;;  %v690_v47 = vadd.f32 %v688_v46, %v670_v37  ;;  %v691_v14 = vadd.f32 %v689_v53, %v671_v6  ;;  %v851_v33 = vpop.permute.xlu1 %850 }
 0x10f   :  { %v742_v16 = vmul.f32 %v741_v27, %v738_v49  ;;  %v743_v20 = vmul.f32 %v741_v27, %v739_v50  ;;  %v748_v55 = vmul.f32 %v747_v30, %v738_v49  ;;  %v749_v61 = vmul.f32 %v747_v30, %v739_v50  ;;  %v849_v23 = vpop.permute.xlu0 %848 }
 0x110   :  { %v778_v31 = vmul.f32 %v777_v39, %v2142_v63  ;;  %v779_v10 = vmul.f32 %v776_v54, %v2145_v0  ;;  %v724_v27 = vadd.f32 %v722_v35, %v684_v13  ;;  %v725_v59 = vadd.f32 %v723_v34, %v685_v24 }
 0x111   :  { %v762_v11 = vmul.f32 %v761_v9, %v758_v3  ;;  %v763_v60 = vmul.f32 %v761_v9, %v759_v48  ;;  %v730_v38 = vadd.f32 %v728_v21, %v690_v47  ;;  %v731_v30 = vadd.f32 %v729_v41, %v691_v14 }
 0x112   :  { %v768_v43 = vmul.f32 %v767_v62, %v758_v3  ;;  %v769_v2 = vmul.f32 %v767_v62, %v759_v48  ;;  %v744_v5 = vadd.f32 %v742_v16, %v724_v27  ;;  %v745_v46 = vadd.f32 %v743_v20, %v725_v59  ;;  %v871_v13 = vpop.permute.xlu1 %870  ;;  %v1729_v3 = vld [vmem:[%s3251_s0] sm:$0xff] }
 0x113   :  { %v782_v53 = vmul.f32 %v781_v4, %v778_v31  ;;  %v783_v49 = vmul.f32 %v781_v4, %v779_v10  ;;  %v750_v50 = vadd.f32 %v748_v55, %v730_v38  ;;  %v751_v37 = vadd.f32 %v749_v61, %v731_v30  ;;  %v869_v24 = vpop.permute.xlu0 %868 }
 0x114   :  { %v852_v9 = vsel %vm324_vm5, %v849_v23, %v851_v33  ;;  %v853_v6 = vsel %vm324_vm5, %v851_v33, %v849_v23  ;;  %v764_v62 = vadd.f32 %v762_v11, %v744_v5  ;;  %v765_v18 = vadd.f32 %v763_v60, %v745_v46 }
 0x115   :  { %v788_v1 = vmul.f32 %v787_v32, %v778_v31  ;;  %v789_v35 = vmul.f32 %v787_v32, %v779_v10  ;;  %v770_v4 = vadd.f32 %v768_v43, %v750_v50  ;;  %v771_v34 = vadd.f32 %v769_v2, %v751_v37  ;;  %v1730_v31 = vld [vmem:[%s3251_s0 + $0x8] sm:$0xff]  ;;  %s2869_s0 = sld [smem:[#allocation5 + $0x20]] }
 0x116   :  { %v3317_v48 = vstv %s2597_s1  ;;  %v1057_v41 = vstv %s2703_s8  ;;  %v784_v54 = vadd.f32 %v782_v53, %v764_v62  ;;  %v785_v39 = vadd.f32 %v783_v49, %v765_v18  ;;  %v891_v16 = vpop.permute.xlu1 %890  ;;  %s2875_s1 = sld [smem:[#allocation5 + $0x44]]  ;;  %s3355_s8 = smov 111  }
 0x117   :  { %v2746_v21 = vmul.f32 %v1729_v3, %v3317_v48  ;;  %v854_v47 = vmul.f32 %v852_v9, %v2171_v19  ;;  %v855_v14 = vmul.f32 %v853_v6, %v2174_v22  ;;  %v889_v20 = vpop.permute.xlu0 %888  ;;  %v1003_v32 = vstv %s2709_s9  ;;  %s1261_s9 = sld [smem:[#allocation13]] }
 0x118   :  { %v1017_v55 = vstv %s2717_s21  ;;  %v1023_v61 = vstv %s2719_s26  ;;  %v3318_v10 = vmov %v3317_v48  ;;  %v790_v23 = vadd.f32 %v788_v1, %v770_v4  ;;  %s3071_s21 = sld [smem:[#allocation13 + $0x1]]  ;;  %s3077_s26 = sld [smem:[#allocation13 + $0x2]] }
 0x119   :  { %v2759_v33 = vmul.f32 %v1730_v31, %v3318_v10  ;;  %v791_v27 = vadd.f32 %v789_v35, %v771_v34  ;;  %v872_v59 = vsel %vm358_vm6, %v869_v24, %v871_v13  ;;  %v873_v11 = vsel %vm358_vm6, %v871_v13, %v869_v24 }
 0x11a   :  { %v1037_v60 = vrot.slane %v2746_v21, %v2014_v29  ;;  %v1041_v38 = vrot.slane %v2746_v21, %v2011_v28  ;;  %v2769_v30 = vmul.f32 %v1729_v3, %v1057_v41  ;;  %v2771_v43 = vmul.f32 %v1730_v31, %v1057_v41  ;;  %v911_v24 = vpop.permute.xlu1 %910 }
 0x11b   :  { %v818_v2 = vadd.f32 %v2588_v17, %v784_v54  ;;  %v819_v5 = vadd.f32 %v2591_v56, %v785_v39  ;;  %v3319_v46 = vstv %s2527_s12  ;;  %v874_v37 = vmul.f32 %v872_v59, %v2186_v25  ;;  %v909_v62 = vpop.permute.xlu0 %908 }
 0x11c   :  { %v858_v53 = vmul.f32 %v3319_v46, %v854_v47  ;;  %v3320_v49 = vmov %v3319_v46  ;;  %v875_v9 = vmul.f32 %v873_v11, %v2189_v26  ;;  %v892_v6 = vsel %vm392_vm7, %v889_v20, %v891_v16 }
 0x11d   :  { %v859_v50 = vmul.f32 %v3320_v49, %v855_v14  ;;  %v893_v13 = vsel %vm392_vm7, %v891_v16, %v889_v20  ;;  %v846_v17 = vadd.f32 %v2606_v12, %v790_v23  ;;  %v847_v56 = vadd.f32 %v2609_v15, %v791_v27 }
 0x11e   :  { %v3321_v18 = vstv %s2529_s16  ;;  %v1045_v34 = vrot.slane %v2759_v33, %v2014_v29  ;;  %v1049_v3 = vrot.slane %v2759_v33, %v2011_v28  ;;  %v1065_v48 = vrot.slane %v2769_v30, %v2014_v29  ;;  %v951_v23 = vpop.permute.xlu1 %950 }
 0x11f   :  { %v864_v1 = vmul.f32 %v3321_v18, %v854_v47  ;;  %v3322_v35 = vmov %v3321_v18  ;;  %v894_v15 = vmul.f32 %v892_v6, %v2215_v40  ;;  %v895_v41 = vmul.f32 %v893_v13, %v2218_v42  ;;  %v949_v27 = vpop.permute.xlu0 %948 }
 0x120   :  { %v865_v4 = vmul.f32 %v3322_v35, %v855_v14  ;;  %v912_v54 = vsel %vm426_vm8, %v909_v62, %v911_v24  ;;  %v913_v39 = vsel %vm426_vm8, %v911_v24, %v909_v62  ;;  %v860_v47 = vadd.f32 %v858_v53, %v818_v2 }
 0x121   :  { %v861_v14 = vadd.f32 %v859_v50, %v819_v5  ;;  %v3323_v16 = vstv %s2535_s13  ;;  %v866_v59 = vadd.f32 %v864_v1, %v846_v17  ;;  %v3325_v46 = vstv %s2537_s6  ;;  %s1206_s13 = sld [smem:[#allocation11]]  ;;  %s3348_s6 = smov 17  }
 0x122   :  { %v878_v20 = vmul.f32 %v3323_v16, %v874_v37  ;;  %v3324_v31 = vmov %v3323_v16  ;;  %v867_v11 = vadd.f32 %v865_v4, %v847_v56  ;;  %v884_v49 = vmul.f32 %v3325_v46, %v874_v37 }
 0x123   :  { %v879_v10 = vmul.f32 %v3324_v31, %v875_v9  ;;  %v3326_v6 = vmov %v3325_v46  ;;  %v914_v18 = vmul.f32 %v912_v54, %v2249_v7  ;;  %v915_v24 = vmul.f32 %v913_v39, %v2252_v8  ;;  %v971_v54 = vpop.permute.xlu1 %970  ;;  %v969_v39 = vpop.permute.xlu0 %968 }
 0x124   :  { %v885_v13 = vmul.f32 %v3326_v6, %v875_v9  ;;  %v952_v2 = vsel %vm133_vm2, %v949_v27, %v951_v23  ;;  %v953_v5 = vsel %vm133_vm2, %v951_v23, %v949_v27  ;;  %v3327_v53 = vstv %s2549_s14  ;;  %s1671_s14 = sld [smem:[#allocation10 + $0x1]] }
 0x125   :  { %v898_v50 = vmul.f32 %v3327_v53, %v894_v15  ;;  %v3328_v62 = vmov %v3327_v53  ;;  %v3329_v56 = vstv %s2551_s15  ;;  %v880_v35 = vadd.f32 %v878_v20, %v860_v47  ;;  %s3349_s15 = smov 15  }
 0x126   :  { %v899_v17 = vmul.f32 %v3328_v62, %v895_v41  ;;  %v904_v37 = vmul.f32 %v3329_v56, %v894_v15  ;;  %v3330_v1 = vmov %v3329_v56  ;;  %v881_v4 = vadd.f32 %v879_v10, %v861_v14 }
 0x127   :  { %v905_v9 = vmul.f32 %v3330_v1, %v895_v41  ;;  %v886_v23 = vadd.f32 %v884_v49, %v866_v59  ;;  %v887_v27 = vadd.f32 %v885_v13, %v867_v11  ;;  %v954_v46 = vmul.f32 %v953_v5, %v2114_v51 }
 0x128   :  { %v955_v15 = vmul.f32 %v952_v2, %v2117_v52  ;;  %v3331_v41 = vstv %s2557_s18  ;;  %v972_v10 = vsel %vm166_vm1, %v969_v39, %v971_v54  ;;  %v973_v6 = vsel %vm166_vm1, %v971_v54, %v969_v39  ;;  %s3350_s18 = smov 16  }
 0x129   :  { %v918_v47 = vmul.f32 %v3331_v41, %v914_v18  ;;  %v3332_v14 = vmov %v3331_v41  ;;  %v900_v53 = vadd.f32 %v898_v50, %v880_v35  ;;  %v901_v59 = vadd.f32 %v899_v17, %v881_v4  ;;  %v991_v41 = vpop.permute.xlu1 %990 }
 0x12a   :  { %v919_v20 = vmul.f32 %v3332_v14, %v915_v24  ;;  %v906_v11 = vadd.f32 %v904_v37, %v886_v23  ;;  %v907_v49 = vadd.f32 %v905_v9, %v887_v27  ;;  %v3333_v13 = vstv %s2559_s20  ;;  %v989_v14 = vpop.permute.xlu0 %988  ;;  %s3351_s20 = smov 1  }
 0x12b   :  { %v924_v2 = vmul.f32 %v3333_v13, %v914_v18  ;;  %v3334_v5 = vmov %v3333_v13  ;;  %v974_v56 = vmul.f32 %v973_v6, %v2094_v44  ;;  %v975_v1 = vmul.f32 %v972_v10, %v2097_v45 }
 0x12c   :  { %v925_v62 = vmul.f32 %v3334_v5, %v915_v24  ;;  %v3335_v54 = vstv %s2569_s10  ;;  %v992_v37 = vsel %vm200_vm3, %v989_v14, %v991_v41  ;;  %v993_v18 = vsel %vm200_vm3, %v991_v41, %v989_v14  ;;  %s1672_s10 = sld [smem:[#allocation11 + $0x1]] }
 0x12d   :  { %v958_v50 = vmul.f32 %v3335_v54, %v954_v46  ;;  %v3336_v17 = vmov %v3335_v54  ;;  %v920_v9 = vadd.f32 %v918_v47, %v900_v53  ;;  %v921_v24 = vadd.f32 %v919_v20, %v901_v59  ;;  %v1011_v53 = vpop.permute.xlu1 %1010 }
 0x12e   :  { %v959_v35 = vmul.f32 %v3336_v17, %v955_v15  ;;  %v3337_v4 = vstv %s2571_s3  ;;  %v3339_v10 = vstv %s2583_s19  ;;  %v994_v54 = vmul.f32 %v993_v18, %v2124_v57  ;;  %s3352_s3 = smov 127   ;;  %s3353_s19 = smov 113  }
 0x12f   :  { %v964_v39 = vmul.f32 %v3337_v4, %v954_v46  ;;  %v3338_v23 = vmov %v3337_v4  ;;  %v978_v6 = vmul.f32 %v3339_v10, %v974_v56  ;;  %v3340_v13 = vmov %v3339_v10  ;;  %v1009_v46 = vpop.permute.xlu0 %1008 }
 0x130   :  { %v965_v27 = vmul.f32 %v3338_v23, %v955_v15  ;;  %v979_v5 = vmul.f32 %v3340_v13, %v975_v1  ;;  %v995_v17 = vmul.f32 %v992_v37, %v2127_v58  ;;  %v926_v31 = vadd.f32 %v924_v2, %v906_v11 }
 0x131   :  { %v927_v12 = vadd.f32 %v925_v62, %v907_v49  ;;  %v3341_v16 = vstv %s2585_s24  ;;  %v960_v15 = vadd.f32 %v958_v50, %v920_v9  ;;  %v961_v59 = vadd.f32 %v959_v35, %v921_v24  ;;  %v1087_v9 = vpop.permute.xlu1 %1086  ;;  %s3354_s24 = smov 112  }
 0x132   :  { %v984_v41 = vmul.f32 %v3341_v16, %v974_v56  ;;  %v3342_v47 = vmov %v3341_v16  ;;  %v3343_v14 = vstv %s2595_s7  ;;  %v966_v11 = vadd.f32 %v964_v39, %v926_v31  ;;  %s2905_s7 = sld [smem:[#allocation5 + $0x22]] }
 0x133   :  { %v985_v20 = vmul.f32 %v3342_v47, %v975_v1  ;;  %v998_v4 = vmul.f32 %v3343_v14, %v994_v54  ;;  %v3344_v23 = vmov %v3343_v14  ;;  %v967_v49 = vadd.f32 %v965_v27, %v927_v12  ;;  %v1085_v24 = vpop.permute.xlu0 %1084 }
 0x134   :  { %v999_v18 = vmul.f32 %v3344_v23, %v995_v17  ;;  %v1012_v16 = vsel %vm234_vm4, %v1009_v46, %v1011_v53  ;;  %v1013_v2 = vsel %vm234_vm4, %v1011_v53, %v1009_v46  ;;  %v980_v62 = vadd.f32 %v978_v6, %v960_v15 }
 0x135   :  { %v981_v56 = vadd.f32 %v979_v5, %v961_v59  ;;  %v1004_v1 = vmul.f32 %v1003_v32, %v994_v54  ;;  %v1005_v12 = vmul.f32 %v1003_v32, %v995_v17  ;;  %v986_v31 = vadd.f32 %v984_v41, %v966_v11  ;;  %v1107_v15 = vpop.permute.xlu1 %1106 }
 0x136   :  { %v987_v50 = vadd.f32 %v985_v20, %v967_v49  ;;  %v1014_v35 = vmul.f32 %v1013_v2, %v2142_v63  ;;  %v1015_v37 = vmul.f32 %v1012_v16, %v2145_v0  ;;  %v1000_v39 = vadd.f32 %v998_v4, %v980_v62 }
 0x137   :  { %v1001_v27 = vadd.f32 %v999_v18, %v981_v56  ;;  %v1088_v10 = vsel %vm324_vm5, %v1085_v24, %v1087_v9  ;;  %v1089_v6 = vsel %vm324_vm5, %v1087_v9, %v1085_v24  ;;  %v1006_v17 = vadd.f32 %v1004_v1, %v986_v31  ;;  %v1105_v59 = vpop.permute.xlu0 %1104 }
 0x138   :  { %v1018_v13 = vmul.f32 %v1017_v55, %v1014_v35  ;;  %v1019_v32 = vmul.f32 %v1017_v55, %v1015_v37  ;;  %v1024_v5 = vmul.f32 %v1023_v61, %v1014_v35  ;;  %v1025_v54 = vmul.f32 %v1023_v61, %v1015_v37 }
 0x139   :  { %v1007_v41 = vadd.f32 %v1005_v12, %v987_v50  ;;  %v1090_v47 = vmul.f32 %v1088_v10, %v2171_v19  ;;  %v1091_v20 = vmul.f32 %v1089_v6, %v2174_v22  ;;  %v1050_v55 = vsel %vm122_vm0, %v1045_v34, %v1037_v60  ;;  %v1127_v62 = vpop.permute.xlu1 %1126 }
 0x13a   :  { %v1020_v53 = vadd.f32 %v1018_v13, %v1000_v39  ;;  %v1021_v46 = vadd.f32 %v1019_v32, %v1001_v27  ;;  %v1093_v61 = vstv %s2869_s0  ;;  %v1026_v14 = vadd.f32 %v1024_v5, %v1006_v17  ;;  %s3104_s0 = sld [smem:[#allocation13 + $0x4]] }
 0x13b   :  { %v1027_v4 = vadd.f32 %v1025_v54, %v1007_v41  ;;  %v1051_v23 = vsel %vm122_vm0, %v1049_v3, %v1041_v38  ;;  %v1099_v18 = vstv %s2875_s1  ;;  %v3345_v60 = vrot.slane %v2771_v43, %v2014_v29  ;;  %v1125_v50 = vpop.permute.xlu0 %1124  ;;  %s3109_s1 = sld [smem:[#allocation13 + $0x5]] }
 0x13c   :  { %v3346_v11 = vrot.slane %v2769_v30, %v2011_v28  ;;  %v3347_v21 = vrot.slane %v2771_v43, %v2011_v28  ;;  %v1113_v33 = vstv %s2881_s29  ;;  %v1119_v16 = vstv %s2883_s2  ;;  %s3111_s29 = sld [smem:[#allocation13 + $0x6]]  ;;  %s3118_s2 = sld [smem:[#allocation13 + $0x7]] }
 0x13d   :  { %v1078_v34 = vsel %vm122_vm0, %v3345_v60, %v1065_v48  ;;  %v1094_v38 = vmul.f32 %v1093_v61, %v1090_v47  ;;  %v1095_v3 = vmul.f32 %v1093_v61, %v1091_v20  ;;  %v1108_v2 = vsel %vm358_vm6, %v1105_v59, %v1107_v15  ;;  %v1147_v5 = vpop.permute.xlu1 %1146 }
 0x13e   :  { %v1079_v49 = vsel %vm122_vm0, %v3347_v21, %v3346_v11  ;;  %v1109_v29 = vsel %vm358_vm6, %v1107_v15, %v1105_v59  ;;  %v1054_v30 = vadd.f32 %v1050_v55, %v1020_v53  ;;  %v1055_v28 = vadd.f32 %v1051_v23, %v1021_v46 }
 0x13f   :  { %v1100_v43 = vmul.f32 %v1099_v18, %v1090_v47  ;;  %v1101_v48 = vmul.f32 %v1099_v18, %v1091_v20  ;;  %v1082_v56 = vadd.f32 %v1078_v34, %v1026_v14  ;;  %v1083_v1 = vadd.f32 %v1079_v49, %v1027_v4  ;;  %v1145_v20 = vpop.permute.xlu0 %1144 }
 0x140   :  { %v1110_v12 = vmul.f32 %v1108_v2, %v2186_v25  ;;  %v1111_v31 = vmul.f32 %v1109_v29, %v2189_v26  ;;  %v1128_v35 = vsel %vm392_vm7, %v1125_v50, %v1127_v62  ;;  %v1129_v37 = vsel %vm392_vm7, %v1127_v62, %v1125_v50 }
 0x141   :  { %v1133_v39 = vstv %s2905_s7  ;;  %v1139_v27 = vstv %s2907_s4  ;;  %v1130_v13 = vmul.f32 %v1128_v35, %v2215_v40  ;;  %v1131_v32 = vmul.f32 %v1129_v37, %v2218_v42  ;;  %s3126_s7 = sld [smem:[#allocation13 + $0x8]]  ;;  %s3131_s4 = sld [smem:[#allocation13 + $0x9]] }
 0x142   :  { %v1114_v9 = vmul.f32 %v1113_v33, %v1110_v12  ;;  %v1115_v24 = vmul.f32 %v1113_v33, %v1111_v31  ;;  %v1120_v10 = vmul.f32 %v1119_v16, %v1110_v12  ;;  %v1121_v6 = vmul.f32 %v1119_v16, %v1111_v31 }
 0x143   :  { %v1096_v54 = vadd.f32 %v1094_v38, %v1054_v30  ;;  %v1097_v17 = vadd.f32 %v1095_v3, %v1055_v28  ;;  %v1102_v41 = vadd.f32 %v1100_v43, %v1082_v56  ;;  %v1103_v47 = vadd.f32 %v1101_v48, %v1083_v1 }
 0x144   :  { %v1134_v53 = vmul.f32 %v1133_v39, %v1130_v13  ;;  %v1135_v46 = vmul.f32 %v1133_v39, %v1131_v32  ;;  %v1140_v55 = vmul.f32 %v1139_v27, %v1130_v13  ;;  %v1141_v61 = vmul.f32 %v1139_v27, %v1131_v32 }
 0x145   :  { %v1153_v15 = vstv %s2945_s30  ;;  %v1159_v59 = vstv %s2947_s11  ;;  %v1148_v14 = vsel %vm426_vm8, %v1145_v20, %v1147_v5  ;;  %v1149_v4 = vsel %vm426_vm8, %v1147_v5, %v1145_v20  ;;  %s3146_s30 = sld [smem:[#allocation13 + $0xa]]  ;;  %s3149_s11 = sld [smem:[#allocation13 + $0xb]] }
 0x146   :  { %v1116_v23 = vadd.f32 %v1114_v9, %v1096_v54  ;;  %v1117_v18 = vadd.f32 %v1115_v24, %v1097_v17  ;;  %v1122_v60 = vadd.f32 %v1120_v10, %v1102_v41  ;;  %v1123_v34 = vadd.f32 %v1121_v6, %v1103_v47 }
 0x147   :  { %v1150_v11 = vmul.f32 %v1148_v14, %v2249_v7  ;;  %v1151_v21 = vmul.f32 %v1149_v4, %v2252_v8 }
 0x148   :  { %v1136_v49 = vadd.f32 %v1134_v53, %v1116_v23  ;;  %v1137_v33 = vadd.f32 %v1135_v46, %v1117_v18  ;;  %v1142_v16 = vadd.f32 %v1140_v55, %v1122_v60  ;;  %v1143_v38 = vadd.f32 %v1141_v61, %v1123_v34 }
 0x149   :  { %v1154_v3 = vmul.f32 %v1153_v15, %v1150_v11  ;;  %v1155_v2 = vmul.f32 %v1153_v15, %v1151_v21  ;;  %v1160_v29 = vmul.f32 %v1159_v59, %v1150_v11  ;;  %v1161_v30 = vmul.f32 %v1159_v59, %v1151_v21 }
 0x14b   :  { %v2967_v28 = vadd.f32 %v1154_v3, %v1136_v49  ;;  %v2969_v43 = vadd.f32 %v1155_v2, %v1137_v33  ;;  %v2971_v48 = vadd.f32 %v1160_v29, %v1142_v16  ;;  %v2973_v62 = vadd.f32 %v1161_v30, %v1143_v38 }
 0x14d   :  { %v1165_v56 = vsel %vm1164_vm9, %v2967_v28, 0.0  ;;  %v1166_v1 = vsel %vm1164_vm9, %v2969_v43, 0.0  ;;  %v1179_v12 = vmul.f32 %v2967_v28, %v2967_v28  ;;  %v1180_v31 = vmul.f32 %v2969_v43, %v2969_v43 }
 0x14e   :  { %v1167_v50 = vadd.f32 %v1166_v1, %v1165_v56  ;;  %v1212_v35 = vsel %vm1164_vm9, %v2971_v48, 0.0  ;;  %v1213_v37 = vsel %vm1164_vm9, %v2973_v62, 0.0  ;;  %v1226_v39 = vmul.f32 %v2971_v48, %v2971_v48 }
 0x14f   :  { %v1181_v9 = vsel %vm1164_vm9, %v1179_v12, 0.0  ;;  %v1182_v24 = vsel %vm1164_vm9, %v1180_v31, 0.0  ;;  %v1227_v27 = vmul.f32 %v2973_v62, %v2973_v62  ;;  %v1214_v6 = vadd.f32 %v1213_v37, %v1212_v35 }
 0x150   :  { %1168 = vadd.xlane.f32.xlu0 %v1167_v50  ;;  %v1183_v10 = vadd.f32 %v1182_v24, %v1181_v9  ;;  %v1228_v13 = vsel %vm1164_vm9, %v1226_v39, 0.0 }
 0x151   :  { %v1229_v32 = vsel %vm1164_vm9, %v1227_v27, 0.0 }
 0x152   :  { %1184 = vadd.xlane.f32.xlu1 %v1183_v10  ;;  %v1230_v5 = vadd.f32 %v1229_v32, %v1228_v13  ;;  %v1200_v10 = vstv %s1197_s25  ;;  %s3184_s25 = sld [smem:[#allocation13 + $0xe]] }
 0x154   :  { %1215 = vadd.xlane.f32.xlu0 %v1214_v6 }
 0x158   :  { %1231 = vadd.xlane.f32.xlu0 %v1230_v5 }
 0x1dd   :  { %v1169_v54 = vpop.xlane.xlu0 %1168 }
 0x1de   :  { %v1170_v17 = vrot.slane %v1169_v54, 4 }
 0x1df   :  { %v1185_v41 = vpop.xlane.xlu1 %1184 }
 0x1e0   :  { %v1171_v47 = vadd.f32 %v1170_v17, %v1169_v54  ;;  %v1186_v20 = vrot.slane %v1185_v41, 4 }
 0x1e1   :  { %v1216_v53 = vpop.xlane.xlu0 %1215 }
 0x1e2   :  { %v1172_v46 = vrot.slane %v1171_v47, 2  ;;  %v1187_v55 = vadd.f32 %v1186_v20, %v1185_v41  ;;  %v1217_v61 = vrot.slane %v1216_v53, 4  ;;  %v1207_v41 = vstv %s1206_s13  ;;  %s3206_s13 = sld [smem:[#allocation13 + $0x11]] }
 0x1e4   :  { %v1188_v15 = vrot.slane %v1187_v55, 2  ;;  %v1218_v59 = vadd.f32 %v1217_v61, %v1216_v53  ;;  %v1173_v14 = vadd.f32 %v1172_v46, %v1171_v47 }
 0x1e5   :  { %v1232_v4 = vpop.xlane.xlu0 %1231 }
 0x1e6   :  { %v1219_v23 = vrot.slane %v1218_v59, 2  ;;  %v1233_v18 = vrot.slane %v1232_v4, 4  ;;  %v1174_v60 = vrot.slane %v1173_v14, 1  ;;  %v1189_v34 = vadd.f32 %v1188_v15, %v1187_v55 }
 0x1e8   :  { %v1234_v11 = vadd.f32 %v1233_v18, %v1232_v4  ;;  %v1175_v21 = vadd.f32 %v1174_v60, %v1173_v14  ;;  %v1190_v49 = vrot.slane %v1189_v34, 1  ;;  %v1220_v33 = vadd.f32 %v1219_v23, %v1218_v59 }
 0x1e9   :  { %v1254_v18 = vstv %s1672_s10 }
 0x1ea   :  { %v1235_v16 = vrot.slane %v1234_v11, 2  ;;  %1691 = vpush %v1175_v21  ;;  %v1191_v38 = vadd.f32 %v1190_v49, %v1189_v34  ;;  %v1221_v3 = vrot.slane %v1220_v33, 1 }
 0x1ec   :  { %1693 = vpush %v1191_v38  ;;  %v1222_v2 = vadd.f32 %v1221_v3, %v1220_v33  ;;  %v1236_v29 = vadd.f32 %v1235_v16, %v1234_v11 }
 0x1ee   :  { %1695 = vpush %v1222_v2  ;;  %v1237_v30 = vrot.slane %v1236_v29, 1 }
 0x1f0   :  { %v1238_v56 = vadd.f32 %v1237_v30, %v1236_v29 }
 0x1f2   :  { %1697 = vpush %v1238_v56 }
 0x21b   :  { %s1692_s17 = spop %1691 }
 0x21c   :  { %v1177_v1 = vstv %s1692_s17  ;;  %s3165_s17 = sld [smem:[#allocation13 + $0xc]] }
 0x21d   :  { %v1178_v12 = vmul.f32 0.001953125, %v1177_v1  ;;  %s1694_s23 = spop %1693 }
 0x21e   :  { %v1193_v31 = vstv %s1694_s23  ;;  %s3170_s23 = sld [smem:[#allocation13 + $0xd]] }
 0x21f   :  { %v1194_v50 = vmul.f32 0.001953125, %v1193_v31  ;;  %v1195_v35 = vmul.f32 %v1178_v12, %v1178_v12  ;;  %s1696_s12 = spop %1695  ;;  %v1202_v5 = vsub.f32 %v2967_v28, %v1178_v12  ;;  %v1203_v54 = vsub.f32 %v2969_v43, %v1178_v12 }
 0x220   :  { %v1224_v24 = vstv %s1696_s12  ;;  %v1247_v43 = vstv %s1671_s14  ;;  %s3189_s12 = sld [smem:[#allocation13 + $0xf]] }
 0x221   :  { %v1196_v37 = vsub.f32 %v1194_v50, %v1195_v35  ;;  %v1225_v27 = vmul.f32 0.001953125, %v1224_v24 }
 0x223   :  { %v1198_v9 = vadd.f32 1e-05, %v1196_v37  ;;  %s1698_s16 = spop %1697  ;;  %v1242_v32 = vmul.f32 %v1225_v27, %v1225_v27  ;;  %v1249_v4 = vsub.f32 %v2971_v48, %v1225_v27  ;;  %v1250_v34 = vsub.f32 %v2973_v62, %v1225_v27 }
 0x224   :  { %v1240_v39 = vstv %s1698_s16  ;;  %v1270_v37 = vstv %s1261_s9  ;;  %s3195_s16 = sld [smem:[#allocation13 + $0x10]] }
 0x225   :  { %1717 = vrsqrt.f32 %v1198_v9  ;;  %v1241_v6 = vmul.f32 0.001953125, %v1240_v39 }
 0x227   :  { %v1243_v47 = vsub.f32 %v1241_v6, %v1242_v32 }
 0x229   :  { %v1245_v61 = vadd.f32 1e-05, %v1243_v47 }
 0x22b   :  { %1719 = vrsqrt.f32 %v1245_v61 }
 0x22f   :  { %v1718_v13 = vpop.eup %1717 }
 0x230   :  { %v1201_v17 = vmul.f32 %v1718_v13, %v1200_v10  ;;  %v1284_v13 = vstv %s3071_s21 }
 0x232   :  { %v1204_v20 = vmul.f32 %v1202_v5, %v1201_v17  ;;  %v1205_v53 = vmul.f32 %v1203_v54, %v1201_v17 }
 0x234   :  { %v1208_v46 = vadd.f32 %v1207_v41, %v1204_v20  ;;  %v1209_v55 = vadd.f32 %v1207_v41, %v1205_v53  ;;  %v1260_v20 = vstv %s3356_s28  ;;  %v1298_v53 = vstv %s3077_s26 }
 0x235   :  { %v1720_v28 = vpop.eup %1719 }
 0x236   :  { %v2997_v15 = vmax.f32 %v1208_v46, 0.0  ;;  %v2999_v59 = vmax.f32 %v1209_v55, 0.0  ;;  %v1248_v14 = vmul.f32 %v1720_v28, %v1247_v43 }
 0x238   :  { %1264 = vrot.lane.b32.xlu0 %v2999_v59, %s3348_s6  ;;  %1262 = vrot.lane.b32.xlu1 %v2997_v15, %s3348_s6  ;;  %v1251_v23 = vmul.f32 %v1249_v4, %v1248_v14  ;;  %v1252_v48 = vmul.f32 %v1250_v34, %v1248_v14  ;;  %v1312_v4 = vstv %s3083_s5 }
 0x23a   :  { %v1255_v60 = vadd.f32 %v1254_v18, %v1251_v23  ;;  %v1256_v21 = vadd.f32 %v1254_v18, %v1252_v48 }
 0x23c   :  { %1290 = vrot.lane.b32.xlu0 %v2997_v15, %s3349_s15  ;;  %1276 = vrot.lane.b32.xlu1 %v2997_v15, %s3350_s18  ;;  %v3031_v11 = vmax.f32 %v1255_v60, 0.0  ;;  %v3041_v62 = vmax.f32 %v1256_v21, 0.0 }
 0x240   :  { %1304 = vrot.lane.b32.xlu0 %v2997_v15, %s3351_s20  ;;  %1278 = vrot.lane.b32.xlu1 %v2999_v59, %s3350_s18 }
 0x244   :  { %1324 = vrot.lane.b32.xlu0 %v2997_v15, %s3352_s3  ;;  %1292 = vrot.lane.b32.xlu1 %v2999_v59, %s3349_s15 }
 0x248   :  { %1338 = vrot.lane.b32.xlu0 %v2997_v15, %s3353_s19  ;;  %1306 = vrot.lane.b32.xlu1 %v2999_v59, %s3351_s20 }
 0x24c   :  { %1352 = vrot.lane.b32.xlu0 %v2997_v15, %s3354_s24  ;;  %1326 = vrot.lane.b32.xlu1 %v2999_v59, %s3352_s3 }
 0x250   :  { %1366 = vrot.lane.b32.xlu0 %v2997_v15, %s3355_s8  ;;  %1340 = vrot.lane.b32.xlu1 %v2999_v59, %s3353_s19 }
 0x254   :  { %1354 = vrot.lane.b32.xlu1 %v2999_v59, %s3354_s24  ;;  %1380 = vrot.lane.b32.xlu0 %v3031_v11, %s3348_s6 }
 0x258   :  { %1368 = vrot.lane.b32.xlu1 %v2999_v59, %s3355_s8  ;;  %1394 = vrot.lane.b32.xlu0 %v3031_v11, %s3350_s18 }
 0x25c   :  { %1382 = vrot.lane.b32.xlu1 %v3041_v62, %s3348_s6  ;;  %1408 = vrot.lane.b32.xlu0 %v3031_v11, %s3349_s15 }
 0x260   :  { %1396 = vrot.lane.b32.xlu1 %v3041_v62, %s3350_s18  ;;  %1422 = vrot.lane.b32.xlu0 %v3031_v11, %s3351_s20 }
 0x264   :  { %1410 = vrot.lane.b32.xlu1 %v3041_v62, %s3349_s15  ;;  %1442 = vrot.lane.b32.xlu0 %v3031_v11, %s3352_s3 }
 0x268   :  { %1424 = vrot.lane.b32.xlu1 %v3041_v62, %s3351_s20  ;;  %1456 = vrot.lane.b32.xlu0 %v3031_v11, %s3353_s19  ;;  %s3357_s20 = sld [smem:[#allocation20_spill]] }
 0x26c   :  { %1444 = vrot.lane.b32.xlu1 %v3041_v62, %s3352_s3  ;;  %1470 = vrot.lane.b32.xlu0 %v3031_v11, %s3354_s24 }
 0x270   :  { %1458 = vrot.lane.b32.xlu1 %v3041_v62, %s3353_s19  ;;  %1484 = vrot.lane.b32.xlu0 %v3031_v11, %s3355_s8  ;;  %s3358_s19 = sld [smem:[#allocation21_spill]] }
 0x274   :  { %1472 = vrot.lane.b32.xlu1 %v3041_v62, %s3354_s24  ;;  %s1834_s24 = smov [#allocation14]  }
 0x278   :  { %1486 = vrot.lane.b32.xlu1 %v3041_v62, %s3355_s8  ;;  %s1581_s8 = sshll.u32 %s1834_s24, 4  ;;  %s1582_s8 = int_to_ptr.vmem [resolvable:$true] %s1581_s8 }
 0x279   :  { %s1791_s9 = scalar_lea.vmem %s1582_s8, 64  ;;  %p1796_p12 = scmp.lt.s32.totalorder %s1582_s8, %s1582_s8 }
 0x27a   :  { %p1792_p11 = scmp.ne.s32.totalorder %s1582_s8, %s1791_s9  ;;  %p1797_p13 = scmp.lt.s32.totalorder %s1791_s9, %s1791_s9 }
 0x27c   :  { %p1798_p0 = por %p1797_p13, %p1796_p12 }
 0x27e   :  { %p1799_p1 = pnand %p1798_p0, %p1792_p11 }
 0x2aa   :  { %v1263_v49 = vpop.permute.xlu1 %1262  ;;  %v1265_v33 = vpop.permute.xlu0 %1264 }
 0x2ab   :  { %v1266_v29 = vsel %vm133_vm2, %v1263_v49, %v1265_v33  ;;  %v1267_v30 = vsel %vm133_vm2, %v1265_v33, %v1263_v49 }
 0x2ac   :  { %v1268_v50 = vmul.f32 %v1267_v30, %v2114_v51  ;;  %v1269_v35 = vmul.f32 %v1266_v29, %v2117_v52 }
 0x2ae   :  { %v1277_v16 = vpop.permute.xlu1 %1276  ;;  %v1291_v38 = vpop.permute.xlu0 %1290  ;;  %v1271_v54 = vmul.f32 %v1270_v37, %v1268_v50  ;;  %v1272_v17 = vmul.f32 %v1270_v37, %v1269_v35 }
 0x2b0   :  { %v1273_v23 = vadd.f32 %v1271_v54, %v1260_v20  ;;  %v1274_v18 = vadd.f32 %v1272_v17, %v1260_v20 }
 0x2b2   :  { %v1279_v3 = vpop.permute.xlu1 %1278  ;;  %v1305_v2 = vpop.permute.xlu0 %1304 }
 0x2b3   :  { %v1280_v12 = vsel %vm166_vm1, %v1277_v16, %v1279_v3  ;;  %v1281_v31 = vsel %vm166_vm1, %v1279_v3, %v1277_v16 }
 0x2b4   :  { %v1282_v10 = vmul.f32 %v1281_v31, %v2094_v44  ;;  %v1283_v6 = vmul.f32 %v1280_v12, %v2097_v45 }
 0x2b6   :  { %v1293_v56 = vpop.permute.xlu1 %1292  ;;  %v1325_v1 = vpop.permute.xlu0 %1324  ;;  %v1285_v61 = vmul.f32 %v1284_v13, %v1282_v10  ;;  %v1286_v28 = vmul.f32 %v1284_v13, %v1283_v6  ;;  %v1332_v10 = vstv %s3109_s1 }
 0x2b7   :  { %v1294_v9 = vsel %vm200_vm3, %v1291_v38, %v1293_v56  ;;  %v1295_v24 = vsel %vm200_vm3, %v1293_v56, %v1291_v38  ;;  %v1318_v56 = vstv %s3104_s0 }
 0x2b8   :  { %v1296_v41 = vmul.f32 %v1295_v24, %v2124_v57  ;;  %v1297_v47 = vmul.f32 %v1294_v9, %v2127_v58  ;;  %v1287_v49 = vadd.f32 %v1285_v61, %v1273_v23  ;;  %v1288_v33 = vadd.f32 %v1286_v28, %v1274_v18 }
 0x2b9   :  { %v1319_v6 = vmul.f32 %v1318_v56, %v2997_v15 }
 0x2ba   :  { %v1307_v39 = vpop.permute.xlu1 %1306  ;;  %v1339_v27 = vpop.permute.xlu0 %1338  ;;  %v1299_v60 = vmul.f32 %v1298_v53, %v1296_v41  ;;  %v1300_v34 = vmul.f32 %v1298_v53, %v1297_v47  ;;  %v1346_v47 = vstv %s3111_s29 }
 0x2bb   :  { %v1308_v32 = vsel %vm234_vm4, %v1305_v2, %v1307_v39  ;;  %v1309_v5 = vsel %vm234_vm4, %v1307_v39, %v1305_v2 }
 0x2bc   :  { %v1310_v43 = vmul.f32 %v1309_v5, %v2142_v63  ;;  %v1311_v14 = vmul.f32 %v1308_v32, %v2145_v0  ;;  %v1301_v3 = vadd.f32 %v1299_v60, %v1287_v49  ;;  %v1302_v2 = vadd.f32 %v1300_v34, %v1288_v33 }
 0x2bd   :  { %v1374_v33 = vstv %s3126_s7 }
 0x2be   :  { %v1327_v46 = vpop.permute.xlu1 %1326  ;;  %v1353_v55 = vpop.permute.xlu0 %1352  ;;  %v1313_v16 = vmul.f32 %v1312_v4, %v1310_v43  ;;  %v1314_v38 = vmul.f32 %v1312_v4, %v1311_v14  ;;  %v1360_v14 = vstv %s3118_s2 }
 0x2bf   :  { %v1328_v29 = vsel %vm324_vm5, %v1325_v1, %v1327_v46  ;;  %v1329_v30 = vsel %vm324_vm5, %v1327_v46, %v1325_v1  ;;  %v1320_v1 = vmul.f32 %v1318_v56, %v2999_v59 }
 0x2c0   :  { %v1315_v50 = vadd.f32 %v1313_v16, %v1301_v3  ;;  %v1316_v35 = vadd.f32 %v1314_v38, %v1302_v2  ;;  %v1330_v24 = vmul.f32 %v1328_v29, %v2171_v19  ;;  %v1331_v39 = vmul.f32 %v1329_v30, %v2174_v22 }
 0x2c1   :  { %v1388_v3 = vstv %s3131_s4 }
 0x2c2   :  { %v1341_v48 = vpop.permute.xlu1 %1340  ;;  %v1367_v21 = vpop.permute.xlu0 %1366  ;;  %v1321_v41 = vadd.f32 %v1319_v6, %v1315_v50  ;;  %v1322_v59 = vadd.f32 %v1320_v1, %v1316_v35  ;;  %v1333_v20 = vmul.f32 %v1332_v10, %v1330_v24  ;;  %v1334_v15 = vmul.f32 %v1332_v10, %v1331_v39 }
 0x2c3   :  { %v1342_v37 = vsel %vm358_vm6, %v1339_v27, %v1341_v48  ;;  %v1343_v9 = vsel %vm358_vm6, %v1341_v48, %v1339_v27 }
 0x2c4   :  { %v1344_v13 = vmul.f32 %v1342_v37, %v2186_v25  ;;  %v1345_v32 = vmul.f32 %v1343_v9, %v2189_v26  ;;  %v1336_v49 = vadd.f32 %v1334_v15, %v1322_v59 }
 0x2c6   :  { %v1355_v12 = vpop.permute.xlu1 %1354  ;;  %v1381_v31 = vpop.permute.xlu0 %1380  ;;  %v1348_v43 = vmul.f32 %v1346_v47, %v1345_v32 }
 0x2c7   :  { %v1356_v27 = vsel %vm392_vm7, %v1353_v55, %v1355_v12  ;;  %v1357_v5 = vsel %vm392_vm7, %v1355_v12, %v1353_v55  ;;  %v1347_v55 = vmul.f32 %v1346_v47, %v1344_v13  ;;  %v1416_v13 = vstv %s3149_s11 }
 0x2c8   :  { %v1358_v61 = vmul.f32 %v1356_v27, %v2215_v40  ;;  %v1359_v28 = vmul.f32 %v1357_v5, %v2218_v42  ;;  %v1350_v29 = vadd.f32 %v1348_v43, %v1336_v49 }
 0x2ca   :  { %v1369_v54 = vpop.permute.xlu1 %1368  ;;  %v1395_v17 = vpop.permute.xlu0 %1394  ;;  %v1361_v16 = vmul.f32 %v1360_v14, %v1358_v61  ;;  %v1362_v38 = vmul.f32 %v1360_v14, %v1359_v28  ;;  %v1430_v28 = vstv %s3165_s17 }
 0x2cb   :  { %v1370_v53 = vsel %vm426_vm8, %v1367_v21, %v1369_v54  ;;  %v1371_v46 = vsel %vm426_vm8, %v1369_v54, %v1367_v21  ;;  %v1335_v21 = vadd.f32 %v1333_v20, %v1321_v41 }
 0x2cc   :  { %v1372_v18 = vmul.f32 %v1370_v53, %v2249_v7  ;;  %v1373_v60 = vmul.f32 %v1371_v46, %v2252_v8  ;;  %v1364_v1 = vadd.f32 %v1362_v38, %v1350_v29 }
 0x2cd   :  { %v1349_v2 = vadd.f32 %v1347_v55, %v1335_v21 }
 0x2ce   :  { %v1383_v4 = vpop.permute.xlu1 %1382  ;;  %v1409_v23 = vpop.permute.xlu0 %1408  ;;  %v1375_v35 = vmul.f32 %v1374_v33, %v1372_v18  ;;  %v1376_v37 = vmul.f32 %v1374_v33, %v1373_v60 }
 0x2cf   :  { %v1384_v34 = vsel %vm133_vm2, %v1381_v31, %v1383_v4  ;;  %v1385_v48 = vsel %vm133_vm2, %v1383_v4, %v1381_v31 }
 0x2d0   :  { %v1386_v30 = vmul.f32 %v1385_v48, %v2114_v51  ;;  %v1387_v56 = vmul.f32 %v1384_v34, %v2117_v52  ;;  %v1363_v51 = vadd.f32 %v1361_v16, %v1349_v2  ;;  %v1402_v52 = vstv %s3146_s30 }
 0x2d1   :  { %v1378_v5 = vadd.f32 %v1376_v37, %v1364_v1 }
 0x2d2   :  { %v1397_v12 = vpop.permute.xlu1 %1396  ;;  %v1423_v50 = vpop.permute.xlu0 %1422  ;;  %v1389_v10 = vmul.f32 %v1388_v3, %v1386_v30  ;;  %v1390_v6 = vmul.f32 %v1388_v3, %v1387_v56  ;;  %v1377_v27 = vadd.f32 %v1375_v35, %v1363_v51 }
 0x2d3   :  { %v1398_v31 = vsel %vm166_vm1, %v1395_v17, %v1397_v12  ;;  %v1399_v9 = vsel %vm166_vm1, %v1397_v12, %v1395_v17 }
 0x2d4   :  { %v1400_v24 = vmul.f32 %v1399_v9, %v2094_v44  ;;  %v1401_v39 = vmul.f32 %v1398_v31, %v2097_v45  ;;  %v1391_v20 = vadd.f32 %v1389_v10, %v1377_v27  ;;  %v1392_v15 = vadd.f32 %v1390_v6, %v1378_v5 }
 0x2d5   :  { %v1464_v9 = vstv %s3189_s12 }
 0x2d6   :  { %v1411_v32 = vpop.permute.xlu1 %1410  ;;  %v1403_v17 = vmul.f32 %v1402_v52, %v1400_v24  ;;  %v1404_v45 = vmul.f32 %v1402_v52, %v1401_v39  ;;  %v1443_v47 = vpop.permute.xlu0 %1442  ;;  %v1478_v39 = vstv %s3195_s16 }
 0x2d7   :  { %v1412_v54 = vsel %vm200_vm3, %v1409_v23, %v1411_v32  ;;  %v1413_v44 = vsel %vm200_vm3, %v1411_v32, %v1409_v23  ;;  %v1436_v23 = vstv %s3170_s23 }
 0x2d8   :  { %v1414_v41 = vmul.f32 %v1413_v44, %v2124_v57  ;;  %v1415_v59 = vmul.f32 %v1412_v54, %v2127_v58  ;;  %v1405_v14 = vadd.f32 %v1403_v17, %v1391_v20  ;;  %v1406_v57 = vadd.f32 %v1404_v45, %v1392_v15 }
 0x2d9   :  { %v1437_v38 = vmul.f32 %v1436_v23, %v3031_v11  ;;  %v1438_v3 = vmul.f32 %v1436_v23, %v3041_v62  ;;  %v1492_v44 = vstv %s3206_s13 }
 0x2da   :  { %v1417_v53 = vmul.f32 %v1416_v13, %v1414_v41  ;;  %v1418_v46 = vmul.f32 %v1416_v13, %v1415_v59  ;;  %v1425_v61 = vpop.permute.xlu1 %1424  ;;  %v1457_v21 = vpop.permute.xlu0 %1456 }
 0x2db   :  { %v1426_v55 = vsel %vm234_vm4, %v1423_v50, %v1425_v61  ;;  %v1427_v43 = vsel %vm234_vm4, %v1425_v61, %v1423_v50  ;;  %v1450_v50 = vstv %s3184_s25 }
 0x2dc   :  { %v1428_v4 = vmul.f32 %v1427_v43, %v2142_v63  ;;  %v1429_v58 = vmul.f32 %v1426_v55, %v2145_v0  ;;  %v1419_v18 = vadd.f32 %v1417_v53, %v1405_v14  ;;  %v1420_v60 = vadd.f32 %v1418_v46, %v1406_v57 }
 0x2de   :  { %v1431_v34 = vmul.f32 %v1430_v28, %v1428_v4  ;;  %v1432_v48 = vmul.f32 %v1430_v28, %v1429_v58  ;;  %v1445_v49 = vpop.permute.xlu1 %1444  ;;  %v1471_v11 = vpop.permute.xlu0 %1470 }
 0x2df   :  { %v1446_v33 = vsel %vm324_vm5, %v1443_v47, %v1445_v49  ;;  %v1447_v16 = vsel %vm324_vm5, %v1445_v49, %v1443_v47 }
 0x2e0   :  { %v1433_v63 = vadd.f32 %v1431_v34, %v1419_v18  ;;  %v1434_v0 = vadd.f32 %v1432_v48, %v1420_v60  ;;  %v1448_v30 = vmul.f32 %v1446_v33, %v2171_v19  ;;  %v1449_v56 = vmul.f32 %v1447_v16, %v2174_v22 }
 0x2e2   :  { %v1439_v2 = vadd.f32 %v1437_v38, %v1433_v63  ;;  %v1440_v29 = vadd.f32 %v1438_v3, %v1434_v0  ;;  %v1459_v12 = vpop.permute.xlu1 %1458  ;;  %v1451_v24 = vmul.f32 %v1450_v50, %v1448_v30  ;;  %v1452_v19 = vmul.f32 %v1450_v50, %v1449_v56  ;;  %v1485_v32 = vpop.permute.xlu0 %1484 }
 0x2e3   :  { %v1460_v35 = vsel %vm358_vm6, %v1457_v21, %v1459_v12  ;;  %v1461_v37 = vsel %vm358_vm6, %v1459_v12, %v1457_v21 }
 0x2e4   :  { %v1462_v62 = vmul.f32 %v1460_v35, %v2186_v25  ;;  %v1463_v31 = vmul.f32 %v1461_v37, %v2189_v26  ;;  %v1453_v13 = vadd.f32 %v1451_v24, %v1439_v2  ;;  %v1454_v26 = vadd.f32 %v1452_v19, %v1440_v29 }
 0x2e5   :  { %v1534_v35 = vstv %s3357_s20 }
 0x2e6   :  { %v1473_v22 = vpop.permute.xlu1 %1472  ;;  %v1465_v52 = vmul.f32 %v1464_v9, %v1462_v62  ;;  %v1466_v10 = vmul.f32 %v1464_v9, %v1463_v31  ;;  %v1539_v9 = vstv %s3358_s19 }
 0x2e7   :  { %v1474_v51 = vsel %vm392_vm7, %v1471_v11, %v1473_v22  ;;  %v1475_v1 = vsel %vm392_vm7, %v1473_v22, %v1471_v11 }
 0x2e8   :  { %v1476_v6 = vmul.f32 %v1474_v51, %v2215_v40  ;;  %v1477_v25 = vmul.f32 %v1475_v1, %v2218_v42  ;;  %v1467_v41 = vadd.f32 %v1465_v52, %v1453_v13  ;;  %v1468_v59 = vadd.f32 %v1466_v10, %v1454_v26 }
 0x2ea   :  { %v1479_v27 = vmul.f32 %v1478_v39, %v1476_v6  ;;  %v1480_v5 = vmul.f32 %v1478_v39, %v1477_v25  ;;  %v1487_v54 = vpop.permute.xlu1 %1486 }
 0x2eb   :  { %v1488_v17 = vsel %vm426_vm8, %v1485_v32, %v1487_v54  ;;  %v1489_v45 = vsel %vm426_vm8, %v1487_v54, %v1485_v32 }
 0x2ec   :  { %v1490_v47 = vmul.f32 %v1488_v17, %v2249_v7  ;;  %v1491_v40 = vmul.f32 %v1489_v45, %v2252_v8  ;;  %v1481_v42 = vadd.f32 %v1479_v27, %v1467_v41  ;;  %v1482_v20 = vadd.f32 %v1480_v5, %v1468_v59 }
 0x2ee   :  { %v1493_v15 = vmul.f32 %v1492_v44, %v1490_v47  ;;  %v1494_v53 = vmul.f32 %v1492_v44, %v1491_v40 }
 0x2f0   :  { %v1495_v46 = vadd.f32 %v1493_v15, %v1481_v42  ;;  %v1496_v61 = vadd.f32 %v1494_v53, %v1482_v20 }
 0x2f2   :  { %v1497_v28 = vsel %vm1164_vm9, %v1495_v46, 0.0  ;;  %v1498_v55 = vsel %vm1164_vm9, %v1496_v61, 0.0  ;;  %v1511_v43 = vmul.f32 %v1495_v46, %v1495_v46  ;;  %v1512_v14 = vmul.f32 %v1496_v61, %v1496_v61 }
 0x2f3   :  { %v1499_v36 = vadd.f32 %v1498_v55, %v1497_v28 }
 0x2f4   :  { %v1513_v57 = vsel %vm1164_vm9, %v1511_v43, 0.0  ;;  %v1514_v4 = vsel %vm1164_vm9, %v1512_v14, 0.0 }
 0x2f5   :  { %1500 = vadd.xlane.f32.xlu0 %v1499_v36  ;;  %v1515_v7 = vadd.f32 %v1514_v4, %v1513_v57 }
 0x2f7   :  { %1516 = vadd.xlane.f32.xlu1 %v1515_v7 }
 0x382   :  { %v1501_v8 = vpop.xlane.xlu0 %1500 }
 0x383   :  { %v1502_v58 = vrot.slane %v1501_v8, 4 }
 0x384   :  { %v1517_v23 = vpop.xlane.xlu1 %1516 }
 0x385   :  { %v1503_v18 = vadd.f32 %v1502_v58, %v1501_v8  ;;  %v1518_v60 = vrot.slane %v1517_v23, 4 }
 0x387   :  { %v1504_v34 = vrot.slane %v1503_v18, 2  ;;  %v1519_v48 = vadd.f32 %v1518_v60, %v1517_v23 }
 0x389   :  { %v1520_v21 = vrot.slane %v1519_v48, 2  ;;  %v1505_v49 = vadd.f32 %v1504_v34, %v1503_v18 }
 0x38b   :  { %v1521_v33 = vadd.f32 %v1520_v21, %v1519_v48  ;;  %v1506_v16 = vrot.slane %v1505_v49, 1 }
 0x38d   :  { %v1507_v63 = vadd.f32 %v1506_v16, %v1505_v49  ;;  %v1522_v0 = vrot.slane %v1521_v33, 1 }
 0x38f   :  { %1699 = vpush %v1507_v63  ;;  %v1523_v38 = vadd.f32 %v1522_v0, %v1521_v33 }
 0x391   :  { %1701 = vpush %v1523_v38 }
 0x3c0   :  { %s1700_s6 = spop %1699 }
 0x3c1   :  { %v1509_v3 = vstv %s1700_s6 }
 0x3c2   :  { %v1510_v2 = vmul.f32 0.001953125, %v1509_v3  ;;  %s1702_s14 = spop %1701 }
 0x3c3   :  { %v1525_v29 = vstv %s1702_s14 }
 0x3c4   :  { %v1526_v30 = vmul.f32 0.001953125, %v1525_v29  ;;  %v1527_v56 = vmul.f32 %v1510_v2, %v1510_v2  ;;  %v1529_v11 = vsub.f32 %v1495_v46, %v1510_v2  ;;  %v1530_v62 = vsub.f32 %v1496_v61, %v1510_v2 }
 0x3c6   :  { %v1528_v12 = vsub.f32 %v1526_v30, %v1527_v56 }
 0x3c8   :  { %v1532_v50 = vadd.f32 1e-05, %v1528_v12 }
 0x3ca   :  { %1721 = vrsqrt.f32 %v1532_v50 }
 0x3d4   :  { %v1722_v37 = vpop.eup %1721 }
 0x3d5   :  { %v1535_v31 = vmul.f32 %v1722_v37, %v1534_v35 }
 0x3d7   :  { %v1536_v24 = vmul.f32 %v1535_v31, %v1529_v11  ;;  %v1537_v19 = vmul.f32 %v1535_v31, %v1530_v62 }
 0x3d9   :  { %v1540_v22 = vadd.f32 %v1539_v9, %v1536_v24  ;;  %v1541_v39 = vadd.f32 %v1539_v9, %v1537_v19 }
 0x3db   :  { %v1542_v51 = vmax.f32 %v1540_v22, 0.0  ;;  %v1543_v1 = vmax.f32 %v1541_v39, 0.0 }
 0x3dd   :  { %v1544_v52 = vsel %vm1164_vm9, %v1542_v51, -inf  ;;  %v1545_v10 = vsel %vm1164_vm9, %v1543_v1, -inf }
 0x3de   :  { %v1546_v6 = vmax.f32 %v1544_v52, %v1545_v10 }
 0x3e0   :  { %1547 = vmax.xlane.f32.xlu0 %v1546_v6 }
 0x46d   :  { %v1548_v25 = vpop.xlane.xlu0 %1547 }
 0x46e   :  { %v1549_v13 = vsub.f32 %v1542_v51, %v1548_v25  ;;  %v1550_v26 = vsub.f32 %v1543_v1, %v1548_v25 }
 0x470   :  { %v1551_v32 = vmul.f32 1.442695, %v1549_v13  ;;  %v1553_v27 = vmul.f32 1.442695, %v1550_v26 }
 0x472   :  { %1723 = vpow2.f32 %v1551_v32 }
 0x473   :  { %1725 = vpow2.f32 %v1553_v27 }
 0x47c   :  { %v1724_v5 = vpop.eup %1723 }
 0x47d   :  { %v1726_v54 = vpop.eup %1725  ;;  %v1555_v44 = vsel %vm1164_vm9, %v1724_v5, 0.0 }
 0x47e   :  { %v1556_v17 = vsel %vm1164_vm9, %v1726_v54, 0.0 }
 0x47f   :  { %v1557_v45 = vadd.f32 %v1556_v17, %v1555_v44 }
 0x481   :  { %1558 = vadd.xlane.f32.xlu0 %v1557_v45 }
 0x50e   :  { %v1559_v41 = vpop.xlane.xlu0 %1558 }
 0x50f   :  { %1727 = vrcp.f32 %v1559_v41 }
 0x519   :  { %v1728_v59 = vpop.eup %1727 }
 0x51a   :  { %v1561_v47 = vmul.f32 %v1728_v59, %v1724_v5  ;;  %v1562_v40 = vmul.f32 %v1728_v59, %v1726_v54 }
 0x51c   :  { %v1565_v42 = vcombine.low %v1561_v47, %v1562_v40 }
 0x51e   :  { %1690 = vst.sshfl [vmem:[#allocation14] sm:$0x33 pattern:$0x76325410] %v1565_v42 }
 0x51f   :  { %1802 = shalt.err (!%p1799_p1)
}
 0x520   :  { %s3359_s5 = sld [smem:[#allocation22_spill]] }
 0x526   :  { %s1803_s22 = scalar_lea.hbm %s3359_s5, 64 }
 0x527   :  { %p1804_p2 = scmp.ne.s32.totalorder %s3359_s5, %s1803_s22  ;;  %p1807_p3 = scmp.lt.u32.totalorder %s1803_s22, %s3359_s5 }
 0x529   :  { %p1809_p4 = pnand %p1807_p3, %p1804_p2 }
 0x52b   :  { %1812 = shalt.err (!%p1809_p4)
}
 0x52c   :  { %1584 = dma.vmem_to_hbm [thread:$0]  %s1582_s8, 64, %s3359_s5, [#allocation6]  }
 0x52d   :  { %1819 = dma.done.wait [#allocation6], 64  }
 0x52e   :  { %1820 = vsyncadd [#allocation6], 4294967232 }
 0x52f   :  { %1588 = vsyncpa [#allocation6], 1 }
 0x530   :  { %1589 = vsyncpa [#allocation7], 1 }
 0x531   :  { %1590 = vsyncpa [#allocation9], 1 }
 0x532   :  { %1591 = vsyncpa [#allocation12], 1 }

</bundles_post_ra>
